<compile_context>
chip_gen: v6e
topology: v6e:2x2x1
jax: 0.10.0
libtpu: 0.0.40
codegen_flags: <defaults>
</compile_context>

<pallas_src>
import math

import jax
import jax.numpy as jnp
from jax.experimental import pallas as pl
from jax.experimental.pallas import tpu as pltpu


# -----------------------------------------------------------------------------
# Pallas kernel: temporal encoding + kernel-MLP + contraction
# (K folded inside; MLP layer 2 fused with the contraction per input channel)
# -----------------------------------------------------------------------------
def _cont_conv_kernel(dt_ref, f_ref, invpos_ref, phase_ref,
                      w1t_ref, b1t_ref, w2t_ref, b2t_ref, o_ref):
    K = dt_ref.shape[1]
    IN = f_ref.shape[2]
    OUT = o_ref.shape[1]
    TL = o_ref.shape[2]

    inv_pos = invpos_ref[...]                          # (IN, 1) f32
    phase = phase_ref[...]                             # (IN, 1) f32
    w1t = w1t_ref[...]                                 # (H, IN) bf16  (tiny)
    b1t = b1t_ref[...]                                 # (H, 1)  f32   (tiny)

    acc = jnp.zeros((OUT, TL), jnp.float32)
    for kk in range(K):                                # K is tiny (e.g. 3): unroll
        # temporal encoding: enc[i] = sin(dt / pos_vec[i] + phase[i]); phase=pi/2
        # on odd channels turns sin into cos -> a single transcendental (EUP).
        dt = dt_ref[0, pl.ds(kk, 1), :]                # (1, TL)
        enc = jnp.sin(dt * inv_pos + phase)            # (IN, TL) f32

        # kernel-MLP layer 1 on the MXU (bf16 inputs, f32 accumulation) + ReLU.
        h = jnp.dot(w1t, enc.astype(jnp.bfloat16),
                    preferred_element_type=jnp.float32) + b1t
        h_bf = jnp.maximum(h, 0.0).astype(jnp.bfloat16)    # (H, TL) bf16

        # kernel-MLP layer 2 fused with the contraction, chunked per input
        # channel i: kv_i (OUT, TL) is consumed immediately, never forming the
        # (IN*OUT, TL) kv slab (avoids vreg spills through the vst slot).
        for i in range(IN):
            w2_i = w2t_ref[pl.ds(i * OUT, OUT), :]     # (OUT, H) bf16
            b2_i = b2t_ref[pl.ds(i * OUT, OUT), :]     # (OUT, 1) f32
            f_i = f_ref[0, kk, pl.ds(i, 1), :]         # (1, TL)  zero where masked
            kv_i = jnp.dot(w2_i, h_bf,
                           preferred_element_type=jnp.float32) + b2_i
            acc = acc + kv_i * f_i                     # row i broadcast over OUT

    o_ref[0, :, :] = acc                               # single lane-dense store


def cont_conv1d_sim_pallas(delta_times, features_kern, inv_pos, phase,
                           w1, b1, w2, b2, *, tile_l=1024):
    """delta_times: (bs, K, Lsim) f32; features_kern: (bs, K, IN, Lsim)
    (channels on the sublane axis, already zeroed at masked positions;
    f32 or bf16 — bf16 is recommended on v5e to halve the dominant HBM stream)."""
    bs, K, lsim = delta_times.shape
    in_ch = features_kern.shape[2]
    hidden = w1.shape[1]
    out_ch = w2.shape[1] // in_ch

    # lane-dense tiles: multiple of 128, no larger than needed for this Lsim
    l_round = pl.cdiv(lsim, 128) * 128
    tile_l = max(128, min((tile_l // 128) * 128, l_round))
    # v7x megacore: keep >= 2 grid cells so both TensorCores get work
    if bs * pl.cdiv(l_round, tile_l) < 2 and l_round >= 256:
        tile_l = pl.cdiv(pl.cdiv(l_round, 2), 128) * 128
    l_pad = pl.cdiv(lsim, tile_l) * tile_l
    pad = l_pad - lsim

    dt = jnp.pad(delta_times, ((0, 0), (0, 0), (0, pad)))             # (bs,K,Lp)
    fk = jnp.pad(features_kern, ((0, 0), (0, 0), (0, 0), (0, pad)))   # (bs,K,IN,Lp)

    # transposed ("channels on sublanes") parameters; weights in bf16 for the MXU
    w1t = w1.T.astype(jnp.bfloat16)                        # (H, IN)
    b1t = b1.reshape(hidden, 1).astype(jnp.float32)        # (H, 1)
    w2t = w2.T.astype(jnp.bfloat16)                        # (IN*OUT, H)
    b2t = b2.reshape(in_ch * out_ch, 1).astype(jnp.float32)
    inv_pos_c = inv_pos.reshape(in_ch, 1).astype(jnp.float32)
    phase_c = phase.reshape(in_ch, 1).astype(jnp.float32)

    grid = (bs, l_pad // tile_l)
    out_t = pl.pallas_call(
        _cont_conv_kernel,
        out_shape=jax.ShapeDtypeStruct((bs, out_ch, l_pad), jnp.float32),
        grid_spec=pltpu.PrefetchScalarGridSpec(
            num_scalar_prefetch=0,
            grid=grid,
            in_specs=[
                pl.BlockSpec((1, K, tile_l), lambda b, l: (b, 0, l)),
                pl.BlockSpec((1, K, in_ch, tile_l), lambda b, l: (b, 0, 0, l)),
                pl.BlockSpec((in_ch, 1), lambda b, l: (0, 0)),
                pl.BlockSpec((in_ch, 1), lambda b, l: (0, 0)),
                pl.BlockSpec((hidden, in_ch), lambda b, l: (0, 0)),
                pl.BlockSpec((hidden, 1), lambda b, l: (0, 0)),
                pl.BlockSpec((in_ch * out_ch, hidden), lambda b, l: (0, 0)),
                pl.BlockSpec((in_ch * out_ch, 1), lambda b, l: (0, 0)),
            ],
            out_specs=pl.BlockSpec((1, out_ch, tile_l), lambda b, l: (b, 0, l)),
        ),
        compiler_params=pltpu.CompilerParams(
            dimension_semantics=("parallel", "parallel")),
    )(dt, fk, inv_pos_c, phase_c, w1t, b1t, w2t, b2t)

    # back to the module's (bs, Lsim, OUT) layout (cheap XLA transpose, off hot path)
    return jnp.transpose(out_t, (0, 2, 1))[:, :lsim, :]


# -----------------------------------------------------------------------------
# Glue: JAX replica of __conv_matrix_constructor (identity-kernel conv == gather)
# Emits features already in the kernel's (bs, K, IN, Lsim) layout and pre-masked.
# TODO(synk): avoid materializing the (sim_size+1)x-repeated features/delta_times
# in HBM by expanding over the sim grid inside the kernel (e.g. a static 0/1
# expansion matmul on the otherwise-idle MXU, or scalar-prefetch index maps).
# -----------------------------------------------------------------------------
def conv_matrix_constructor(times, true_times, true_features, non_pad_mask,
                            kernel_size, sim_size):
    bs, L = true_times.shape
    K, S = kernel_size, sim_size
    rep = S + 1
    lsim = rep * (L - 1) + 1

    npm = non_pad_mask.astype(jnp.float32)
    tt_pad = jnp.pad(true_times, ((0, 0), (K, 0)))
    tf_pad = jnp.pad(true_features, ((0, 0), (K, 0), (0, 0)))
    m_pad = jnp.pad(npm, ((0, 0), (K, 0)))

    # gather index: position t looks back at true event t + k - K  (k = 0..K-1)
    idx = jnp.arange(L)[None, :] + jnp.arange(K)[:, None]          # (K, L)
    pct = tt_pad[:, idx]                                           # (bs, K, L)
    pcf = jnp.transpose(tf_pad[:, idx, :], (0, 1, 3, 2))           # (bs, K, IN, L)
    dtm = m_pad[:, idx] * npm[:, None, :]                          # (bs, K, L)

    # expand over the simulated-time grid
    pct_e = jnp.repeat(pct, rep, axis=2)[:, :, :lsim]
    pcf_e = jnp.repeat(pcf, rep, axis=3)[:, :, :, :lsim]
    dtm_e = jnp.repeat(dtm, rep, axis=2)[:, :, S:S + lsim]
    mask = dtm_e > 0.5

    delta_times = jnp.where(mask, times[:, None, :] - pct_e, 0.0)      # (bs,K,Lsim)
    features_kern = jnp.where(mask[:, :, None, :], pcf_e, 0.0)         # (bs,K,IN,Lsim)
    return delta_times, features_kern, mask


# -----------------------------------------------------------------------------
# Pure-JAX reference of the full forward (original sin/cos + explicit masking)
# -----------------------------------------------------------------------------
def reference_forward(delta_times, features_kern_t, dt_mask,
                      inv_pos, w1, b1, w2, b2, out_ch):
    bs, K, lsim = delta_times.shape
    in_ch = features_kern_t.shape[2]
    enc_raw = delta_times[..., None] * inv_pos                     # (bs,K,L,IN)
    ch = jnp.arange(in_ch)
    enc = jnp.where(ch % 2 == 0, jnp.sin(enc_raw), jnp.cos(enc_raw))
    h = jax.nn.relu(enc @ w1 + b1[0])
    kv = h @ w2 + b2[0]
    kv = kv * dt_mask[..., None].astype(jnp.float32)
    kv = kv.reshape(bs, K, lsim, in_ch, out_ch)
    feats = jnp.swapaxes(features_kern_t, 2, 3)                    # (bs,K,L,IN)
    return (feats[..., None] * kv).sum(axis=(1, 3))


# -----------------------------------------------------------------------------
if __name__ == "__main__":
    # small, deterministic setup
    bs, max_len = 2, 8
    in_ch, out_ch, hidden = 8, 16, 32
    kernel_size, sim_size = 3, 3
    lsim = (sim_size + 1) * (max_len - 1) + 1          # 29

    key = jax.random.PRNGKey(0)
    k_dt, k_feat, k_w1, k_b1, k_w2, k_b2 = jax.random.split(key, 6)

    # true event times (sorted), padded sequences (batch 1 has 2 padded rows ->
    # exercises the "features_kern pre-zeroed at masked positions" invariant)
    gaps = jax.random.uniform(k_dt, (bs, max_len), minval=0.1, maxval=1.0)
    true_times = jnp.cumsum(gaps, axis=1)
    lengths = jnp.array([max_len, max_len - 2])
    non_pad_mask = jnp.arange(max_len)[None, :] < lengths[:, None]
    true_times = jnp.where(non_pad_mask, true_times, 0.0).astype(jnp.float32)
    true_features = jax.random.normal(k_feat, (bs, max_len, in_ch), jnp.float32)
    true_features = jnp.where(non_pad_mask[..., None], true_features, 0.0)

    # all (true + simulated) times: linear interpolation between true events
    frac = jnp.arange(sim_size + 1, dtype=jnp.float32) / (sim_size + 1)
    seg = (true_times[:, :-1, None]
           + (true_times[:, 1:, None] - true_times[:, :-1, None]) * frac[None, None, :])
    times = jnp.concatenate(
        [seg.reshape(bs, (max_len - 1) * (sim_size + 1)), true_times[:, -1:]], axis=1)
    assert times.shape == (bs, lsim)

    # deterministic kernel-MLP params: Linear(in,hid) -> ReLU -> Linear(hid, in*out)
    w1 = (jax.random.normal(k_w1, (in_ch, hidden), jnp.float32)
          / math.sqrt(in_ch))
    b1 = jax.random.normal(k_b1, (1, hidden), jnp.float32) * 0.01
    w2 = (jax.random.normal(k_w2, (hidden, in_ch * out_ch), jnp.float32)
          / math.sqrt(hidden))
    b2 = jax.random.normal(k_b2, (1, in_ch * out_ch), jnp.float32) * 0.01

    # position_vec from the module's __init__; single-sin phase trick constants
    position_vec = jnp.array(
        [math.pow(10000.0, 2.0 * (i // 2) / in_ch) for i in range(in_ch)],
        dtype=jnp.float32)
    inv_pos = 1.0 / position_vec                                   # (IN,)
    phase = jnp.array([0.0 if i % 2 == 0 else math.pi / 2 for i in range(in_ch)],
                      dtype=jnp.float32)                           # (IN,)

    # glue (index plumbing), then Pallas hot path
    delta_times, features_kern, dt_mask = conv_matrix_constructor(
        times, true_times, true_features, non_pad_mask, kernel_size, sim_size)

    out = cont_conv1d_sim_pallas(
        delta_times, features_kern, inv_pos, phase, w1, b1, w2, b2)
    out = jax.block_until_ready(out)
    assert out.shape == (bs, lsim, out_ch)

    ref = reference_forward(delta_times, features_kern, dt_mask,
                            inv_pos, w1, b1, w2, b2, out_ch)
    err = float(jnp.max(jnp.abs(out - ref)))
    scale = float(jnp.max(jnp.abs(ref)))
    # Tolerance from a bf16 error model: two bf16 casts (enc, h) at ~2^-8 rel each,
    # propagated through a 24-term (K*IN) contraction -> worst-case well under 3%.
    assert err <= 3e-2 * scale + 1e-2, (err, scale)

    print("KERNEL_OK")
</pallas_src>

<mosaic_0001>
module attributes {stable_mosaic.version = 11 : i64} {
  func.func @_cont_conv_kernel(%arg0: i32, %arg1: i32, %arg2: memref<1x3x128xf32, #tpu.memory_space<vmem>>, %arg3: memref<1x3x8x128xf32, #tpu.memory_space<vmem>>, %arg4: memref<8x1xf32, #tpu.memory_space<vmem>>, %arg5: memref<8x1xf32, #tpu.memory_space<vmem>>, %arg6: memref<32x8xbf16, #tpu.memory_space<vmem>>, %arg7: memref<32x1xf32, #tpu.memory_space<vmem>>, %arg8: memref<128x32xbf16, #tpu.memory_space<vmem>>, %arg9: memref<128x1xf32, #tpu.memory_space<vmem>>, %arg10: memref<1x16x128xf32, #tpu.memory_space<vmem>>) attributes {dimension_semantics = [#tpu.dimension_semantics<parallel>, #tpu.dimension_semantics<parallel>], iteration_bounds = array<i64: 2, 1>, scalar_prefetch = 0 : i64, scratch_operands = 0 : i64, tpu.core_type = #tpu.core_type<tc>, window_params = [{transform_indices = @transform_0, window_bounds = array<i64: 1, 3, 128>}, {transform_indices = @transform_1, window_bounds = array<i64: 1, 3, 8, 128>}, {pipeline_mode = #tpu.pipeline_mode<synchronous>, transform_indices = @transform_2, window_bounds = array<i64: 8, 1>}, {pipeline_mode = #tpu.pipeline_mode<synchronous>, transform_indices = @transform_3, window_bounds = array<i64: 8, 1>}, {pipeline_mode = #tpu.pipeline_mode<synchronous>, transform_indices = @transform_4, window_bounds = array<i64: 32, 8>}, {pipeline_mode = #tpu.pipeline_mode<synchronous>, transform_indices = @transform_5, window_bounds = array<i64: 32, 1>}, {pipeline_mode = #tpu.pipeline_mode<synchronous>, transform_indices = @transform_6, window_bounds = array<i64: 128, 32>}, {pipeline_mode = #tpu.pipeline_mode<synchronous>, transform_indices = @transform_7, window_bounds = array<i64: 128, 1>}, {transform_indices = @transform_8, window_bounds = array<i64: 1, 16, 128>}]} {
    %c0 = arith.constant 0 : index
    %c0_0 = arith.constant 0 : index
    %0 = vector.load %arg4[%c0, %c0_0] : memref<8x1xf32, #tpu.memory_space<vmem>>, vector<8x1xf32>
    %c0_1 = arith.constant 0 : index
    %c0_2 = arith.constant 0 : index
    %1 = vector.load %arg5[%c0_1, %c0_2] : memref<8x1xf32, #tpu.memory_space<vmem>>, vector<8x1xf32>
    %c0_3 = arith.constant 0 : index
    %c0_4 = arith.constant 0 : index
    %2 = vector.load %arg6[%c0_3, %c0_4] : memref<32x8xbf16, #tpu.memory_space<vmem>>, vector<32x8xbf16>
    %c0_5 = arith.constant 0 : index
    %c0_6 = arith.constant 0 : index
    %3 = vector.load %arg7[%c0_5, %c0_6] : memref<32x1xf32, #tpu.memory_space<vmem>>, vector<32x1xf32>
    %cst = arith.constant 0.000000e+00 : f32
    %4 = vector.broadcast %cst : f32 to vector<16x128xf32>
    %c0_7 = arith.constant 0 : index
    %c0_8 = arith.constant 0 : index
    %c0_9 = arith.constant 0 : index
    %5 = vector.load %arg2[%c0_7, %c0_8, %c0_9] : memref<1x3x128xf32, #tpu.memory_space<vmem>>, vector<1x1x128xf32>
    %6 = vector.shape_cast %5 : vector<1x1x128xf32> to vector<1x128xf32>
    %7 = vector.broadcast %6 : vector<1x128xf32> to vector<8x128xf32>
    %8 = vector.broadcast %0 : vector<8x1xf32> to vector<8x128xf32>
    %9 = arith.mulf %7, %8 : vector<8x128xf32>
    %10 = vector.broadcast %1 : vector<8x1xf32> to vector<8x128xf32>
    %11 = arith.addf %9, %10 : vector<8x128xf32>
    %12 = math.sin %11 : vector<8x128xf32>
    %13 = arith.truncf %12 : vector<8x128xf32> to vector<8x128xbf16>
    %cst_10 = arith.constant dense<0.000000e+00> : vector<32x128xf32>
    %14 = tpu.matmul %2, %13, %cst_10 {dimension_numbers = #tpu.dot_dimension_numbers<[1], [0], [0], [1], [0, 0, 1, 1], [], []>} : vector<32x8xbf16>, vector<8x128xbf16>, vector<32x128xf32> -> vector<32x128xf32>
    %15 = vector.broadcast %3 : vector<32x1xf32> to vector<32x128xf32>
    %16 = arith.addf %14, %15 : vector<32x128xf32>
    %cst_11 = arith.constant 0.000000e+00 : f32
    %17 = vector.broadcast %cst_11 : f32 to vector<32x128xf32>
    %18 = arith.maximumf %16, %17 : vector<32x128xf32>
    %19 = arith.truncf %18 : vector<32x128xf32> to vector<32x128xbf16>
    %c0_12 = arith.constant 0 : index
    %c0_13 = arith.constant 0 : index
    %20 = vector.load %arg8[%c0_12, %c0_13] : memref<128x32xbf16, #tpu.memory_space<vmem>>, vector<16x32xbf16>
    %c0_14 = arith.constant 0 : index
    %c0_15 = arith.constant 0 : index
    %21 = vector.load %arg9[%c0_14, %c0_15] : memref<128x1xf32, #tpu.memory_space<vmem>>, vector<16x1xf32>
    %c0_16 = arith.constant 0 : index
    %c0_17 = arith.constant 0 : index
    %c0_18 = arith.constant 0 : index
    %c0_19 = arith.constant 0 : index
    %22 = vector.load %arg3[%c0_16, %c0_17, %c0_18, %c0_19] : memref<1x3x8x128xf32, #tpu.memory_space<vmem>>, vector<1x1x1x128xf32>
    %23 = vector.shape_cast %22 : vector<1x1x1x128xf32> to vector<1x128xf32>
    %cst_20 = arith.constant dense<0.000000e+00> : vector<16x128xf32>
    %24 = tpu.matmul %20, %19, %cst_20 {dimension_numbers = #tpu.dot_dimension_numbers<[1], [0], [0], [1], [0, 0, 1, 1], [], []>} : vector<16x32xbf16>, vector<32x128xbf16>, vector<16x128xf32> -> vector<16x128xf32>
    %25 = vector.broadcast %21 : vector<16x1xf32> to vector<16x128xf32>
    %26 = arith.addf %24, %25 : vector<16x128xf32>
    %27 = vector.broadcast %23 : vector<1x128xf32> to vector<16x128xf32>
    %28 = arith.mulf %26, %27 : vector<16x128xf32>
    %29 = arith.addf %4, %28 : vector<16x128xf32>
    %c16 = arith.constant 16 : index
    %c0_21 = arith.constant 0 : index
    %30 = vector.load %arg8[%c16, %c0_21] : memref<128x32xbf16, #tpu.memory_space<vmem>>, vector<16x32xbf16>
    %c16_22 = arith.constant 16 : index
    %c0_23 = arith.constant 0 : index
    %31 = vector.load %arg9[%c16_22, %c0_23] : memref<128x1xf32, #tpu.memory_space<vmem>>, vector<16x1xf32>
    %c0_24 = arith.constant 0 : index
    %c0_25 = arith.constant 0 : index
    %c1 = arith.constant 1 : index
    %c0_26 = arith.constant 0 : index
    %32 = vector.load %arg3[%c0_24, %c0_25, %c1, %c0_26] : memref<1x3x8x128xf32, #tpu.memory_space<vmem>>, vector<1x1x1x128xf32>
    %33 = vector.shape_cast %32 : vector<1x1x1x128xf32> to vector<1x128xf32>
    %cst_27 = arith.constant dense<0.000000e+00> : vector<16x128xf32>
    %34 = tpu.matmul %30, %19, %cst_27 {dimension_numbers = #tpu.dot_dimension_numbers<[1], [0], [0], [1], [0, 0, 1, 1], [], []>} : vector<16x32xbf16>, vector<32x128xbf16>, vector<16x128xf32> -> vector<16x128xf32>
    %35 = vector.broadcast %31 : vector<16x1xf32> to vector<16x128xf32>
    %36 = arith.addf %34, %35 : vector<16x128xf32>
    %37 = vector.broadcast %33 : vector<1x128xf32> to vector<16x128xf32>
    %38 = arith.mulf %36, %37 : vector<16x128xf32>
    %39 = arith.addf %29, %38 : vector<16x128xf32>
    %c32 = arith.constant 32 : index
    %c0_28 = arith.constant 0 : index
    %40 = vector.load %arg8[%c32, %c0_28] : memref<128x32xbf16, #tpu.memory_space<vmem>>, vector<16x32xbf16>
    %c32_29 = arith.constant 32 : index
    %c0_30 = arith.constant 0 : index
    %41 = vector.load %arg9[%c32_29, %c0_30] : memref<128x1xf32, #tpu.memory_space<vmem>>, vector<16x1xf32>
    %c0_31 = arith.constant 0 : index
    %c0_32 = arith.constant 0 : index
    %c2 = arith.constant 2 : index
    %c0_33 = arith.constant 0 : index
    %42 = vector.load %arg3[%c0_31, %c0_32, %c2, %c0_33] : memref<1x3x8x128xf32, #tpu.memory_space<vmem>>, vector<1x1x1x128xf32>
    %43 = vector.shape_cast %42 : vector<1x1x1x128xf32> to vector<1x128xf32>
    %cst_34 = arith.constant dense<0.000000e+00> : vector<16x128xf32>
    %44 = tpu.matmul %40, %19, %cst_34 {dimension_numbers = #tpu.dot_dimension_numbers<[1], [0], [0], [1], [0, 0, 1, 1], [], []>} : vector<16x32xbf16>, vector<32x128xbf16>, vector<16x128xf32> -> vector<16x128xf32>
    %45 = vector.broadcast %41 : vector<16x1xf32> to vector<16x128xf32>
    %46 = arith.addf %44, %45 : vector<16x128xf32>
    %47 = vector.broadcast %43 : vector<1x128xf32> to vector<16x128xf32>
    %48 = arith.mulf %46, %47 : vector<16x128xf32>
    %49 = arith.addf %39, %48 : vector<16x128xf32>
    %c48 = arith.constant 48 : index
    %c0_35 = arith.constant 0 : index
    %50 = vector.load %arg8[%c48, %c0_35] : memref<128x32xbf16, #tpu.memory_space<vmem>>, vector<16x32xbf16>
    %c48_36 = arith.constant 48 : index
    %c0_37 = arith.constant 0 : index
    %51 = vector.load %arg9[%c48_36, %c0_37] : memref<128x1xf32, #tpu.memory_space<vmem>>, vector<16x1xf32>
    %c0_38 = arith.constant 0 : index
    %c0_39 = arith.constant 0 : index
    %c3 = arith.constant 3 : index
    %c0_40 = arith.constant 0 : index
    %52 = vector.load %arg3[%c0_38, %c0_39, %c3, %c0_40] : memref<1x3x8x128xf32, #tpu.memory_space<vmem>>, vector<1x1x1x128xf32>
    %53 = vector.shape_cast %52 : vector<1x1x1x128xf32> to vector<1x128xf32>
    %cst_41 = arith.constant dense<0.000000e+00> : vector<16x128xf32>
    %54 = tpu.matmul %50, %19, %cst_41 {dimension_numbers = #tpu.dot_dimension_numbers<[1], [0], [0], [1], [0, 0, 1, 1], [], []>} : vector<16x32xbf16>, vector<32x128xbf16>, vector<16x128xf32> -> vector<16x128xf32>
    %55 = vector.broadcast %51 : vector<16x1xf32> to vector<16x128xf32>
    %56 = arith.addf %54, %55 : vector<16x128xf32>
    %57 = vector.broadcast %53 : vector<1x128xf32> to vector<16x128xf32>
    %58 = arith.mulf %56, %57 : vector<16x128xf32>
    %59 = arith.addf %49, %58 : vector<16x128xf32>
    %c64 = arith.constant 64 : index
    %c0_42 = arith.constant 0 : index
    %60 = vector.load %arg8[%c64, %c0_42] : memref<128x32xbf16, #tpu.memory_space<vmem>>, vector<16x32xbf16>
    %c64_43 = arith.constant 64 : index
    %c0_44 = arith.constant 0 : index
    %61 = vector.load %arg9[%c64_43, %c0_44] : memref<128x1xf32, #tpu.memory_space<vmem>>, vector<16x1xf32>
    %c0_45 = arith.constant 0 : index
    %c0_46 = arith.constant 0 : index
    %c4 = arith.constant 4 : index
    %c0_47 = arith.constant 0 : index
    %62 = vector.load %arg3[%c0_45, %c0_46, %c4, %c0_47] : memref<1x3x8x128xf32, #tpu.memory_space<vmem>>, vector<1x1x1x128xf32>
    %63 = vector.shape_cast %62 : vector<1x1x1x128xf32> to vector<1x128xf32>
    %cst_48 = arith.constant dense<0.000000e+00> : vector<16x128xf32>
    %64 = tpu.matmul %60, %19, %cst_48 {dimension_numbers = #tpu.dot_dimension_numbers<[1], [0], [0], [1], [0, 0, 1, 1], [], []>} : vector<16x32xbf16>, vector<32x128xbf16>, vector<16x128xf32> -> vector<16x128xf32>
    %65 = vector.broadcast %61 : vector<16x1xf32> to vector<16x128xf32>
    %66 = arith.addf %64, %65 : vector<16x128xf32>
    %67 = vector.broadcast %63 : vector<1x128xf32> to vector<16x128xf32>
    %68 = arith.mulf %66, %67 : vector<16x128xf32>
    %69 = arith.addf %59, %68 : vector<16x128xf32>
    %c80 = arith.constant 80 : index
    %c0_49 = arith.constant 0 : index
    %70 = vector.load %arg8[%c80, %c0_49] : memref<128x32xbf16, #tpu.memory_space<vmem>>, vector<16x32xbf16>
    %c80_50 = arith.constant 80 : index
    %c0_51 = arith.constant 0 : index
    %71 = vector.load %arg9[%c80_50, %c0_51] : memref<128x1xf32, #tpu.memory_space<vmem>>, vector<16x1xf32>
    %c0_52 = arith.constant 0 : index
    %c0_53 = arith.constant 0 : index
    %c5 = arith.constant 5 : index
    %c0_54 = arith.constant 0 : index
    %72 = vector.load %arg3[%c0_52, %c0_53, %c5, %c0_54] : memref<1x3x8x128xf32, #tpu.memory_space<vmem>>, vector<1x1x1x128xf32>
    %73 = vector.shape_cast %72 : vector<1x1x1x128xf32> to vector<1x128xf32>
    %cst_55 = arith.constant dense<0.000000e+00> : vector<16x128xf32>
    %74 = tpu.matmul %70, %19, %cst_55 {dimension_numbers = #tpu.dot_dimension_numbers<[1], [0], [0], [1], [0, 0, 1, 1], [], []>} : vector<16x32xbf16>, vector<32x128xbf16>, vector<16x128xf32> -> vector<16x128xf32>
    %75 = vector.broadcast %71 : vector<16x1xf32> to vector<16x128xf32>
    %76 = arith.addf %74, %75 : vector<16x128xf32>
    %77 = vector.broadcast %73 : vector<1x128xf32> to vector<16x128xf32>
    %78 = arith.mulf %76, %77 : vector<16x128xf32>
    %79 = arith.addf %69, %78 : vector<16x128xf32>
    %c96 = arith.constant 96 : index
    %c0_56 = arith.constant 0 : index
    %80 = vector.load %arg8[%c96, %c0_56] : memref<128x32xbf16, #tpu.memory_space<vmem>>, vector<16x32xbf16>
    %c96_57 = arith.constant 96 : index
    %c0_58 = arith.constant 0 : index
    %81 = vector.load %arg9[%c96_57, %c0_58] : memref<128x1xf32, #tpu.memory_space<vmem>>, vector<16x1xf32>
    %c0_59 = arith.constant 0 : index
    %c0_60 = arith.constant 0 : index
    %c6 = arith.constant 6 : index
    %c0_61 = arith.constant 0 : index
    %82 = vector.load %arg3[%c0_59, %c0_60, %c6, %c0_61] : memref<1x3x8x128xf32, #tpu.memory_space<vmem>>, vector<1x1x1x128xf32>
    %83 = vector.shape_cast %82 : vector<1x1x1x128xf32> to vector<1x128xf32>
    %cst_62 = arith.constant dense<0.000000e+00> : vector<16x128xf32>
    %84 = tpu.matmul %80, %19, %cst_62 {dimension_numbers = #tpu.dot_dimension_numbers<[1], [0], [0], [1], [0, 0, 1, 1], [], []>} : vector<16x32xbf16>, vector<32x128xbf16>, vector<16x128xf32> -> vector<16x128xf32>
    %85 = vector.broadcast %81 : vector<16x1xf32> to vector<16x128xf32>
    %86 = arith.addf %84, %85 : vector<16x128xf32>
    %87 = vector.broadcast %83 : vector<1x128xf32> to vector<16x128xf32>
    %88 = arith.mulf %86, %87 : vector<16x128xf32>
    %89 = arith.addf %79, %88 : vector<16x128xf32>
    %c112 = arith.constant 112 : index
    %c0_63 = arith.constant 0 : index
    %90 = vector.load %arg8[%c112, %c0_63] : memref<128x32xbf16, #tpu.memory_space<vmem>>, vector<16x32xbf16>
    %c112_64 = arith.constant 112 : index
    %c0_65 = arith.constant 0 : index
    %91 = vector.load %arg9[%c112_64, %c0_65] : memref<128x1xf32, #tpu.memory_space<vmem>>, vector<16x1xf32>
    %c0_66 = arith.constant 0 : index
    %c0_67 = arith.constant 0 : index
    %c7 = arith.constant 7 : index
    %c0_68 = arith.constant 0 : index
    %92 = vector.load %arg3[%c0_66, %c0_67, %c7, %c0_68] : memref<1x3x8x128xf32, #tpu.memory_space<vmem>>, vector<1x1x1x128xf32>
    %93 = vector.shape_cast %92 : vector<1x1x1x128xf32> to vector<1x128xf32>
    %cst_69 = arith.constant dense<0.000000e+00> : vector<16x128xf32>
    %94 = tpu.matmul %90, %19, %cst_69 {dimension_numbers = #tpu.dot_dimension_numbers<[1], [0], [0], [1], [0, 0, 1, 1], [], []>} : vector<16x32xbf16>, vector<32x128xbf16>, vector<16x128xf32> -> vector<16x128xf32>
    %95 = vector.broadcast %91 : vector<16x1xf32> to vector<16x128xf32>
    %96 = arith.addf %94, %95 : vector<16x128xf32>
    %97 = vector.broadcast %93 : vector<1x128xf32> to vector<16x128xf32>
    %98 = arith.mulf %96, %97 : vector<16x128xf32>
    %99 = arith.addf %89, %98 : vector<16x128xf32>
    %c0_70 = arith.constant 0 : index
    %c1_71 = arith.constant 1 : index
    %c0_72 = arith.constant 0 : index
    %100 = vector.load %arg2[%c0_70, %c1_71, %c0_72] : memref<1x3x128xf32, #tpu.memory_space<vmem>>, vector<1x1x128xf32>
    %101 = vector.shape_cast %100 : vector<1x1x128xf32> to vector<1x128xf32>
    %102 = vector.broadcast %101 : vector<1x128xf32> to vector<8x128xf32>
    %103 = vector.broadcast %0 : vector<8x1xf32> to vector<8x128xf32>
    %104 = arith.mulf %102, %103 : vector<8x128xf32>
    %105 = vector.broadcast %1 : vector<8x1xf32> to vector<8x128xf32>
    %106 = arith.addf %104, %105 : vector<8x128xf32>
    %107 = math.sin %106 : vector<8x128xf32>
    %108 = arith.truncf %107 : vector<8x128xf32> to vector<8x128xbf16>
    %cst_73 = arith.constant dense<0.000000e+00> : vector<32x128xf32>
    %109 = tpu.matmul %2, %108, %cst_73 {dimension_numbers = #tpu.dot_dimension_numbers<[1], [0], [0], [1], [0, 0, 1, 1], [], []>} : vector<32x8xbf16>, vector<8x128xbf16>, vector<32x128xf32> -> vector<32x128xf32>
    %110 = vector.broadcast %3 : vector<32x1xf32> to vector<32x128xf32>
    %111 = arith.addf %109, %110 : vector<32x128xf32>
    %cst_74 = arith.constant 0.000000e+00 : f32
    %112 = vector.broadcast %cst_74 : f32 to vector<32x128xf32>
    %113 = arith.maximumf %111, %112 : vector<32x128xf32>
    %114 = arith.truncf %113 : vector<32x128xf32> to vector<32x128xbf16>
    %c0_75 = arith.constant 0 : index
    %c0_76 = arith.constant 0 : index
    %115 = vector.load %arg8[%c0_75, %c0_76] : memref<128x32xbf16, #tpu.memory_space<vmem>>, vector<16x32xbf16>
    %c0_77 = arith.constant 0 : index
    %c0_78 = arith.constant 0 : index
    %116 = vector.load %arg9[%c0_77, %c0_78] : memref<128x1xf32, #tpu.memory_space<vmem>>, vector<16x1xf32>
    %c0_79 = arith.constant 0 : index
    %c1_80 = arith.constant 1 : index
    %c0_81 = arith.constant 0 : index
    %c0_82 = arith.constant 0 : index
    %117 = vector.load %arg3[%c0_79, %c1_80, %c0_81, %c0_82] : memref<1x3x8x128xf32, #tpu.memory_space<vmem>>, vector<1x1x1x128xf32>
    %118 = vector.shape_cast %117 : vector<1x1x1x128xf32> to vector<1x128xf32>
    %cst_83 = arith.constant dense<0.000000e+00> : vector<16x128xf32>
    %119 = tpu.matmul %115, %114, %cst_83 {dimension_numbers = #tpu.dot_dimension_numbers<[1], [0], [0], [1], [0, 0, 1, 1], [], []>} : vector<16x32xbf16>, vector<32x128xbf16>, vector<16x128xf32> -> vector<16x128xf32>
    %120 = vector.broadcast %116 : vector<16x1xf32> to vector<16x128xf32>
    %121 = arith.addf %119, %120 : vector<16x128xf32>
    %122 = vector.broadcast %118 : vector<1x128xf32> to vector<16x128xf32>
    %123 = arith.mulf %121, %122 : vector<16x128xf32>
    %124 = arith.addf %99, %123 : vector<16x128xf32>
    %c16_84 = arith.constant 16 : index
    %c0_85 = arith.constant 0 : index
    %125 = vector.load %arg8[%c16_84, %c0_85] : memref<128x32xbf16, #tpu.memory_space<vmem>>, vector<16x32xbf16>
    %c16_86 = arith.constant 16 : index
    %c0_87 = arith.constant 0 : index
    %126 = vector.load %arg9[%c16_86, %c0_87] : memref<128x1xf32, #tpu.memory_space<vmem>>, vector<16x1xf32>
    %c0_88 = arith.constant 0 : index
    %c1_89 = arith.constant 1 : index
    %c1_90 = arith.constant 1 : index
    %c0_91 = arith.constant 0 : index
    %127 = vector.load %arg3[%c0_88, %c1_89, %c1_90, %c0_91] : memref<1x3x8x128xf32, #tpu.memory_space<vmem>>, vector<1x1x1x128xf32>
    %128 = vector.shape_cast %127 : vector<1x1x1x128xf32> to vector<1x128xf32>
    %cst_92 = arith.constant dense<0.000000e+00> : vector<16x128xf32>
    %129 = tpu.matmul %125, %114, %cst_92 {dimension_numbers = #tpu.dot_dimension_numbers<[1], [0], [0], [1], [0, 0, 1, 1], [], []>} : vector<16x32xbf16>, vector<32x128xbf16>, vector<16x128xf32> -> vector<16x128xf32>
    %130 = vector.broadcast %126 : vector<16x1xf32> to vector<16x128xf32>
    %131 = arith.addf %129, %130 : vector<16x128xf32>
    %132 = vector.broadcast %128 : vector<1x128xf32> to vector<16x128xf32>
    %133 = arith.mulf %131, %132 : vector<16x128xf32>
    %134 = arith.addf %124, %133 : vector<16x128xf32>
    %c32_93 = arith.constant 32 : index
    %c0_94 = arith.constant 0 : index
    %135 = vector.load %arg8[%c32_93, %c0_94] : memref<128x32xbf16, #tpu.memory_space<vmem>>, vector<16x32xbf16>
    %c32_95 = arith.constant 32 : index
    %c0_96 = arith.constant 0 : index
    %136 = vector.load %arg9[%c32_95, %c0_96] : memref<128x1xf32, #tpu.memory_space<vmem>>, vector<16x1xf32>
    %c0_97 = arith.constant 0 : index
    %c1_98 = arith.constant 1 : index
    %c2_99 = arith.constant 2 : index
    %c0_100 = arith.constant 0 : index
    %137 = vector.load %arg3[%c0_97, %c1_98, %c2_99, %c0_100] : memref<1x3x8x128xf32, #tpu.memory_space<vmem>>, vector<1x1x1x128xf32>
    %138 = vector.shape_cast %137 : vector<1x1x1x128xf32> to vector<1x128xf32>
    %cst_101 = arith.constant dense<0.000000e+00> : vector<16x128xf32>
    %139 = tpu.matmul %135, %114, %cst_101 {dimension_numbers = #tpu.dot_dimension_numbers<[1], [0], [0], [1], [0, 0, 1, 1], [], []>} : vector<16x32xbf16>, vector<32x128xbf16>, vector<16x128xf32> -> vector<16x128xf32>
    %140 = vector.broadcast %136 : vector<16x1xf32> to vector<16x128xf32>
    %141 = arith.addf %139, %140 : vector<16x128xf32>
    %142 = vector.broadcast %138 : vector<1x128xf32> to vector<16x128xf32>
    %143 = arith.mulf %141, %142 : vector<16x128xf32>
    %144 = arith.addf %134, %143 : vector<16x128xf32>
    %c48_102 = arith.constant 48 : index
    %c0_103 = arith.constant 0 : index
    %145 = vector.load %arg8[%c48_102, %c0_103] : memref<128x32xbf16, #tpu.memory_space<vmem>>, vector<16x32xbf16>
    %c48_104 = arith.constant 48 : index
    %c0_105 = arith.constant 0 : index
    %146 = vector.load %arg9[%c48_104, %c0_105] : memref<128x1xf32, #tpu.memory_space<vmem>>, vector<16x1xf32>
    %c0_106 = arith.constant 0 : index
    %c1_107 = arith.constant 1 : index
    %c3_108 = arith.constant 3 : index
    %c0_109 = arith.constant 0 : index
    %147 = vector.load %arg3[%c0_106, %c1_107, %c3_108, %c0_109] : memref<1x3x8x128xf32, #tpu.memory_space<vmem>>, vector<1x1x1x128xf32>
    %148 = vector.shape_cast %147 : vector<1x1x1x128xf32> to vector<1x128xf32>
    %cst_110 = arith.constant dense<0.000000e+00> : vector<16x128xf32>
    %149 = tpu.matmul %145, %114, %cst_110 {dimension_numbers = #tpu.dot_dimension_numbers<[1], [0], [0], [1], [0, 0, 1, 1], [], []>} : vector<16x32xbf16>, vector<32x128xbf16>, vector<16x128xf32> -> vector<16x128xf32>
    %150 = vector.broadcast %146 : vector<16x1xf32> to vector<16x128xf32>
    %151 = arith.addf %149, %150 : vector<16x128xf32>
    %152 = vector.broadcast %148 : vector<1x128xf32> to vector<16x128xf32>
    %153 = arith.mulf %151, %152 : vector<16x128xf32>
    %154 = arith.addf %144, %153 : vector<16x128xf32>
    %c64_111 = arith.constant 64 : index
    %c0_112 = arith.constant 0 : index
    %155 = vector.load %arg8[%c64_111, %c0_112] : memref<128x32xbf16, #tpu.memory_space<vmem>>, vector<16x32xbf16>
    %c64_113 = arith.constant 64 : index
    %c0_114 = arith.constant 0 : index
    %156 = vector.load %arg9[%c64_113, %c0_114] : memref<128x1xf32, #tpu.memory_space<vmem>>, vector<16x1xf32>
    %c0_115 = arith.constant 0 : index
    %c1_116 = arith.constant 1 : index
    %c4_117 = arith.constant 4 : index
    %c0_118 = arith.constant 0 : index
    %157 = vector.load %arg3[%c0_115, %c1_116, %c4_117, %c0_118] : memref<1x3x8x128xf32, #tpu.memory_space<vmem>>, vector<1x1x1x128xf32>
    %158 = vector.shape_cast %157 : vector<1x1x1x128xf32> to vector<1x128xf32>
    %cst_119 = arith.constant dense<0.000000e+00> : vector<16x128xf32>
    %159 = tpu.matmul %155, %114, %cst_119 {dimension_numbers = #tpu.dot_dimension_numbers<[1], [0], [0], [1], [0, 0, 1, 1], [], []>} : vector<16x32xbf16>, vector<32x128xbf16>, vector<16x128xf32> -> vector<16x128xf32>
    %160 = vector.broadcast %156 : vector<16x1xf32> to vector<16x128xf32>
    %161 = arith.addf %159, %160 : vector<16x128xf32>
    %162 = vector.broadcast %158 : vector<1x128xf32> to vector<16x128xf32>
    %163 = arith.mulf %161, %162 : vector<16x128xf32>
    %164 = arith.addf %154, %163 : vector<16x128xf32>
    %c80_120 = arith.constant 80 : index
    %c0_121 = arith.constant 0 : index
    %165 = vector.load %arg8[%c80_120, %c0_121] : memref<128x32xbf16, #tpu.memory_space<vmem>>, vector<16x32xbf16>
    %c80_122 = arith.constant 80 : index
    %c0_123 = arith.constant 0 : index
    %166 = vector.load %arg9[%c80_122, %c0_123] : memref<128x1xf32, #tpu.memory_space<vmem>>, vector<16x1xf32>
    %c0_124 = arith.constant 0 : index
    %c1_125 = arith.constant 1 : index
    %c5_126 = arith.constant 5 : index
    %c0_127 = arith.constant 0 : index
    %167 = vector.load %arg3[%c0_124, %c1_125, %c5_126, %c0_127] : memref<1x3x8x128xf32, #tpu.memory_space<vmem>>, vector<1x1x1x128xf32>
    %168 = vector.shape_cast %167 : vector<1x1x1x128xf32> to vector<1x128xf32>
    %cst_128 = arith.constant dense<0.000000e+00> : vector<16x128xf32>
    %169 = tpu.matmul %165, %114, %cst_128 {dimension_numbers = #tpu.dot_dimension_numbers<[1], [0], [0], [1], [0, 0, 1, 1], [], []>} : vector<16x32xbf16>, vector<32x128xbf16>, vector<16x128xf32> -> vector<16x128xf32>
    %170 = vector.broadcast %166 : vector<16x1xf32> to vector<16x128xf32>
    %171 = arith.addf %169, %170 : vector<16x128xf32>
    %172 = vector.broadcast %168 : vector<1x128xf32> to vector<16x128xf32>
    %173 = arith.mulf %171, %172 : vector<16x128xf32>
    %174 = arith.addf %164, %173 : vector<16x128xf32>
    %c96_129 = arith.constant 96 : index
    %c0_130 = arith.constant 0 : index
    %175 = vector.load %arg8[%c96_129, %c0_130] : memref<128x32xbf16, #tpu.memory_space<vmem>>, vector<16x32xbf16>
    %c96_131 = arith.constant 96 : index
    %c0_132 = arith.constant 0 : index
    %176 = vector.load %arg9[%c96_131, %c0_132] : memref<128x1xf32, #tpu.memory_space<vmem>>, vector<16x1xf32>
    %c0_133 = arith.constant 0 : index
    %c1_134 = arith.constant 1 : index
    %c6_135 = arith.constant 6 : index
    %c0_136 = arith.constant 0 : index
    %177 = vector.load %arg3[%c0_133, %c1_134, %c6_135, %c0_136] : memref<1x3x8x128xf32, #tpu.memory_space<vmem>>, vector<1x1x1x128xf32>
    %178 = vector.shape_cast %177 : vector<1x1x1x128xf32> to vector<1x128xf32>
    %cst_137 = arith.constant dense<0.000000e+00> : vector<16x128xf32>
    %179 = tpu.matmul %175, %114, %cst_137 {dimension_numbers = #tpu.dot_dimension_numbers<[1], [0], [0], [1], [0, 0, 1, 1], [], []>} : vector<16x32xbf16>, vector<32x128xbf16>, vector<16x128xf32> -> vector<16x128xf32>
    %180 = vector.broadcast %176 : vector<16x1xf32> to vector<16x128xf32>
    %181 = arith.addf %179, %180 : vector<16x128xf32>
    %182 = vector.broadcast %178 : vector<1x128xf32> to vector<16x128xf32>
    %183 = arith.mulf %181, %182 : vector<16x128xf32>
    %184 = arith.addf %174, %183 : vector<16x128xf32>
    %c112_138 = arith.constant 112 : index
    %c0_139 = arith.constant 0 : index
    %185 = vector.load %arg8[%c112_138, %c0_139] : memref<128x32xbf16, #tpu.memory_space<vmem>>, vector<16x32xbf16>
    %c112_140 = arith.constant 112 : index
    %c0_141 = arith.constant 0 : index
    %186 = vector.load %arg9[%c112_140, %c0_141] : memref<128x1xf32, #tpu.memory_space<vmem>>, vector<16x1xf32>
    %c0_142 = arith.constant 0 : index
    %c1_143 = arith.constant 1 : index
    %c7_144 = arith.constant 7 : index
    %c0_145 = arith.constant 0 : index
    %187 = vector.load %arg3[%c0_142, %c1_143, %c7_144, %c0_145] : memref<1x3x8x128xf32, #tpu.memory_space<vmem>>, vector<1x1x1x128xf32>
    %188 = vector.shape_cast %187 : vector<1x1x1x128xf32> to vector<1x128xf32>
    %cst_146 = arith.constant dense<0.000000e+00> : vector<16x128xf32>
    %189 = tpu.matmul %185, %114, %cst_146 {dimension_numbers = #tpu.dot_dimension_numbers<[1], [0], [0], [1], [0, 0, 1, 1], [], []>} : vector<16x32xbf16>, vector<32x128xbf16>, vector<16x128xf32> -> vector<16x128xf32>
    %190 = vector.broadcast %186 : vector<16x1xf32> to vector<16x128xf32>
    %191 = arith.addf %189, %190 : vector<16x128xf32>
    %192 = vector.broadcast %188 : vector<1x128xf32> to vector<16x128xf32>
    %193 = arith.mulf %191, %192 : vector<16x128xf32>
    %194 = arith.addf %184, %193 : vector<16x128xf32>
    %c0_147 = arith.constant 0 : index
    %c2_148 = arith.constant 2 : index
    %c0_149 = arith.constant 0 : index
    %195 = vector.load %arg2[%c0_147, %c2_148, %c0_149] : memref<1x3x128xf32, #tpu.memory_space<vmem>>, vector<1x1x128xf32>
    %196 = vector.shape_cast %195 : vector<1x1x128xf32> to vector<1x128xf32>
    %197 = vector.broadcast %196 : vector<1x128xf32> to vector<8x128xf32>
    %198 = vector.broadcast %0 : vector<8x1xf32> to vector<8x128xf32>
    %199 = arith.mulf %197, %198 : vector<8x128xf32>
    %200 = vector.broadcast %1 : vector<8x1xf32> to vector<8x128xf32>
    %201 = arith.addf %199, %200 : vector<8x128xf32>
    %202 = math.sin %201 : vector<8x128xf32>
    %203 = arith.truncf %202 : vector<8x128xf32> to vector<8x128xbf16>
    %cst_150 = arith.constant dense<0.000000e+00> : vector<32x128xf32>
    %204 = tpu.matmul %2, %203, %cst_150 {dimension_numbers = #tpu.dot_dimension_numbers<[1], [0], [0], [1], [0, 0, 1, 1], [], []>} : vector<32x8xbf16>, vector<8x128xbf16>, vector<32x128xf32> -> vector<32x128xf32>
    %205 = vector.broadcast %3 : vector<32x1xf32> to vector<32x128xf32>
    %206 = arith.addf %204, %205 : vector<32x128xf32>
    %cst_151 = arith.constant 0.000000e+00 : f32
    %207 = vector.broadcast %cst_151 : f32 to vector<32x128xf32>
    %208 = arith.maximumf %206, %207 : vector<32x128xf32>
    %209 = arith.truncf %208 : vector<32x128xf32> to vector<32x128xbf16>
    %c0_152 = arith.constant 0 : index
    %c0_153 = arith.constant 0 : index
    %210 = vector.load %arg8[%c0_152, %c0_153] : memref<128x32xbf16, #tpu.memory_space<vmem>>, vector<16x32xbf16>
    %c0_154 = arith.constant 0 : index
    %c0_155 = arith.constant 0 : index
    %211 = vector.load %arg9[%c0_154, %c0_155] : memref<128x1xf32, #tpu.memory_space<vmem>>, vector<16x1xf32>
    %c0_156 = arith.constant 0 : index
    %c2_157 = arith.constant 2 : index
    %c0_158 = arith.constant 0 : index
    %c0_159 = arith.constant 0 : index
    %212 = vector.load %arg3[%c0_156, %c2_157, %c0_158, %c0_159] : memref<1x3x8x128xf32, #tpu.memory_space<vmem>>, vector<1x1x1x128xf32>
    %213 = vector.shape_cast %212 : vector<1x1x1x128xf32> to vector<1x128xf32>
    %cst_160 = arith.constant dense<0.000000e+00> : vector<16x128xf32>
    %214 = tpu.matmul %210, %209, %cst_160 {dimension_numbers = #tpu.dot_dimension_numbers<[1], [0], [0], [1], [0, 0, 1, 1], [], []>} : vector<16x32xbf16>, vector<32x128xbf16>, vector<16x128xf32> -> vector<16x128xf32>
    %215 = vector.broadcast %211 : vector<16x1xf32> to vector<16x128xf32>
    %216 = arith.addf %214, %215 : vector<16x128xf32>
    %217 = vector.broadcast %213 : vector<1x128xf32> to vector<16x128xf32>
    %218 = arith.mulf %216, %217 : vector<16x128xf32>
    %219 = arith.addf %194, %218 : vector<16x128xf32>
    %c16_161 = arith.constant 16 : index
    %c0_162 = arith.constant 0 : index
    %220 = vector.load %arg8[%c16_161, %c0_162] : memref<128x32xbf16, #tpu.memory_space<vmem>>, vector<16x32xbf16>
    %c16_163 = arith.constant 16 : index
    %c0_164 = arith.constant 0 : index
    %221 = vector.load %arg9[%c16_163, %c0_164] : memref<128x1xf32, #tpu.memory_space<vmem>>, vector<16x1xf32>
    %c0_165 = arith.constant 0 : index
    %c2_166 = arith.constant 2 : index
    %c1_167 = arith.constant 1 : index
    %c0_168 = arith.constant 0 : index
    %222 = vector.load %arg3[%c0_165, %c2_166, %c1_167, %c0_168] : memref<1x3x8x128xf32, #tpu.memory_space<vmem>>, vector<1x1x1x128xf32>
    %223 = vector.shape_cast %222 : vector<1x1x1x128xf32> to vector<1x128xf32>
    %cst_169 = arith.constant dense<0.000000e+00> : vector<16x128xf32>
    %224 = tpu.matmul %220, %209, %cst_169 {dimension_numbers = #tpu.dot_dimension_numbers<[1], [0], [0], [1], [0, 0, 1, 1], [], []>} : vector<16x32xbf16>, vector<32x128xbf16>, vector<16x128xf32> -> vector<16x128xf32>
    %225 = vector.broadcast %221 : vector<16x1xf32> to vector<16x128xf32>
    %226 = arith.addf %224, %225 : vector<16x128xf32>
    %227 = vector.broadcast %223 : vector<1x128xf32> to vector<16x128xf32>
    %228 = arith.mulf %226, %227 : vector<16x128xf32>
    %229 = arith.addf %219, %228 : vector<16x128xf32>
    %c32_170 = arith.constant 32 : index
    %c0_171 = arith.constant 0 : index
    %230 = vector.load %arg8[%c32_170, %c0_171] : memref<128x32xbf16, #tpu.memory_space<vmem>>, vector<16x32xbf16>
    %c32_172 = arith.constant 32 : index
    %c0_173 = arith.constant 0 : index
    %231 = vector.load %arg9[%c32_172, %c0_173] : memref<128x1xf32, #tpu.memory_space<vmem>>, vector<16x1xf32>
    %c0_174 = arith.constant 0 : index
    %c2_175 = arith.constant 2 : index
    %c2_176 = arith.constant 2 : index
    %c0_177 = arith.constant 0 : index
    %232 = vector.load %arg3[%c0_174, %c2_175, %c2_176, %c0_177] : memref<1x3x8x128xf32, #tpu.memory_space<vmem>>, vector<1x1x1x128xf32>
    %233 = vector.shape_cast %232 : vector<1x1x1x128xf32> to vector<1x128xf32>
    %cst_178 = arith.constant dense<0.000000e+00> : vector<16x128xf32>
    %234 = tpu.matmul %230, %209, %cst_178 {dimension_numbers = #tpu.dot_dimension_numbers<[1], [0], [0], [1], [0, 0, 1, 1], [], []>} : vector<16x32xbf16>, vector<32x128xbf16>, vector<16x128xf32> -> vector<16x128xf32>
    %235 = vector.broadcast %231 : vector<16x1xf32> to vector<16x128xf32>
    %236 = arith.addf %234, %235 : vector<16x128xf32>
    %237 = vector.broadcast %233 : vector<1x128xf32> to vector<16x128xf32>
    %238 = arith.mulf %236, %237 : vector<16x128xf32>
    %239 = arith.addf %229, %238 : vector<16x128xf32>
    %c48_179 = arith.constant 48 : index
    %c0_180 = arith.constant 0 : index
    %240 = vector.load %arg8[%c48_179, %c0_180] : memref<128x32xbf16, #tpu.memory_space<vmem>>, vector<16x32xbf16>
    %c48_181 = arith.constant 48 : index
    %c0_182 = arith.constant 0 : index
    %241 = vector.load %arg9[%c48_181, %c0_182] : memref<128x1xf32, #tpu.memory_space<vmem>>, vector<16x1xf32>
    %c0_183 = arith.constant 0 : index
    %c2_184 = arith.constant 2 : index
    %c3_185 = arith.constant 3 : index
    %c0_186 = arith.constant 0 : index
    %242 = vector.load %arg3[%c0_183, %c2_184, %c3_185, %c0_186] : memref<1x3x8x128xf32, #tpu.memory_space<vmem>>, vector<1x1x1x128xf32>
    %243 = vector.shape_cast %242 : vector<1x1x1x128xf32> to vector<1x128xf32>
    %cst_187 = arith.constant dense<0.000000e+00> : vector<16x128xf32>
    %244 = tpu.matmul %240, %209, %cst_187 {dimension_numbers = #tpu.dot_dimension_numbers<[1], [0], [0], [1], [0, 0, 1, 1], [], []>} : vector<16x32xbf16>, vector<32x128xbf16>, vector<16x128xf32> -> vector<16x128xf32>
    %245 = vector.broadcast %241 : vector<16x1xf32> to vector<16x128xf32>
    %246 = arith.addf %244, %245 : vector<16x128xf32>
    %247 = vector.broadcast %243 : vector<1x128xf32> to vector<16x128xf32>
    %248 = arith.mulf %246, %247 : vector<16x128xf32>
    %249 = arith.addf %239, %248 : vector<16x128xf32>
    %c64_188 = arith.constant 64 : index
    %c0_189 = arith.constant 0 : index
    %250 = vector.load %arg8[%c64_188, %c0_189] : memref<128x32xbf16, #tpu.memory_space<vmem>>, vector<16x32xbf16>
    %c64_190 = arith.constant 64 : index
    %c0_191 = arith.constant 0 : index
    %251 = vector.load %arg9[%c64_190, %c0_191] : memref<128x1xf32, #tpu.memory_space<vmem>>, vector<16x1xf32>
    %c0_192 = arith.constant 0 : index
    %c2_193 = arith.constant 2 : index
    %c4_194 = arith.constant 4 : index
    %c0_195 = arith.constant 0 : index
    %252 = vector.load %arg3[%c0_192, %c2_193, %c4_194, %c0_195] : memref<1x3x8x128xf32, #tpu.memory_space<vmem>>, vector<1x1x1x128xf32>
    %253 = vector.shape_cast %252 : vector<1x1x1x128xf32> to vector<1x128xf32>
    %cst_196 = arith.constant dense<0.000000e+00> : vector<16x128xf32>
    %254 = tpu.matmul %250, %209, %cst_196 {dimension_numbers = #tpu.dot_dimension_numbers<[1], [0], [0], [1], [0, 0, 1, 1], [], []>} : vector<16x32xbf16>, vector<32x128xbf16>, vector<16x128xf32> -> vector<16x128xf32>
    %255 = vector.broadcast %251 : vector<16x1xf32> to vector<16x128xf32>
    %256 = arith.addf %254, %255 : vector<16x128xf32>
    %257 = vector.broadcast %253 : vector<1x128xf32> to vector<16x128xf32>
    %258 = arith.mulf %256, %257 : vector<16x128xf32>
    %259 = arith.addf %249, %258 : vector<16x128xf32>
    %c80_197 = arith.constant 80 : index
    %c0_198 = arith.constant 0 : index
    %260 = vector.load %arg8[%c80_197, %c0_198] : memref<128x32xbf16, #tpu.memory_space<vmem>>, vector<16x32xbf16>
    %c80_199 = arith.constant 80 : index
    %c0_200 = arith.constant 0 : index
    %261 = vector.load %arg9[%c80_199, %c0_200] : memref<128x1xf32, #tpu.memory_space<vmem>>, vector<16x1xf32>
    %c0_201 = arith.constant 0 : index
    %c2_202 = arith.constant 2 : index
    %c5_203 = arith.constant 5 : index
    %c0_204 = arith.constant 0 : index
    %262 = vector.load %arg3[%c0_201, %c2_202, %c5_203, %c0_204] : memref<1x3x8x128xf32, #tpu.memory_space<vmem>>, vector<1x1x1x128xf32>
    %263 = vector.shape_cast %262 : vector<1x1x1x128xf32> to vector<1x128xf32>
    %cst_205 = arith.constant dense<0.000000e+00> : vector<16x128xf32>
    %264 = tpu.matmul %260, %209, %cst_205 {dimension_numbers = #tpu.dot_dimension_numbers<[1], [0], [0], [1], [0, 0, 1, 1], [], []>} : vector<16x32xbf16>, vector<32x128xbf16>, vector<16x128xf32> -> vector<16x128xf32>
    %265 = vector.broadcast %261 : vector<16x1xf32> to vector<16x128xf32>
    %266 = arith.addf %264, %265 : vector<16x128xf32>
    %267 = vector.broadcast %263 : vector<1x128xf32> to vector<16x128xf32>
    %268 = arith.mulf %266, %267 : vector<16x128xf32>
    %269 = arith.addf %259, %268 : vector<16x128xf32>
    %c96_206 = arith.constant 96 : index
    %c0_207 = arith.constant 0 : index
    %270 = vector.load %arg8[%c96_206, %c0_207] : memref<128x32xbf16, #tpu.memory_space<vmem>>, vector<16x32xbf16>
    %c96_208 = arith.constant 96 : index
    %c0_209 = arith.constant 0 : index
    %271 = vector.load %arg9[%c96_208, %c0_209] : memref<128x1xf32, #tpu.memory_space<vmem>>, vector<16x1xf32>
    %c0_210 = arith.constant 0 : index
    %c2_211 = arith.constant 2 : index
    %c6_212 = arith.constant 6 : index
    %c0_213 = arith.constant 0 : index
    %272 = vector.load %arg3[%c0_210, %c2_211, %c6_212, %c0_213] : memref<1x3x8x128xf32, #tpu.memory_space<vmem>>, vector<1x1x1x128xf32>
    %273 = vector.shape_cast %272 : vector<1x1x1x128xf32> to vector<1x128xf32>
    %cst_214 = arith.constant dense<0.000000e+00> : vector<16x128xf32>
    %274 = tpu.matmul %270, %209, %cst_214 {dimension_numbers = #tpu.dot_dimension_numbers<[1], [0], [0], [1], [0, 0, 1, 1], [], []>} : vector<16x32xbf16>, vector<32x128xbf16>, vector<16x128xf32> -> vector<16x128xf32>
    %275 = vector.broadcast %271 : vector<16x1xf32> to vector<16x128xf32>
    %276 = arith.addf %274, %275 : vector<16x128xf32>
    %277 = vector.broadcast %273 : vector<1x128xf32> to vector<16x128xf32>
    %278 = arith.mulf %276, %277 : vector<16x128xf32>
    %279 = arith.addf %269, %278 : vector<16x128xf32>
    %c112_215 = arith.constant 112 : index
    %c0_216 = arith.constant 0 : index
    %280 = vector.load %arg8[%c112_215, %c0_216] : memref<128x32xbf16, #tpu.memory_space<vmem>>, vector<16x32xbf16>
    %c112_217 = arith.constant 112 : index
    %c0_218 = arith.constant 0 : index
    %281 = vector.load %arg9[%c112_217, %c0_218] : memref<128x1xf32, #tpu.memory_space<vmem>>, vector<16x1xf32>
    %c0_219 = arith.constant 0 : index
    %c2_220 = arith.constant 2 : index
    %c7_221 = arith.constant 7 : index
    %c0_222 = arith.constant 0 : index
    %282 = vector.load %arg3[%c0_219, %c2_220, %c7_221, %c0_222] : memref<1x3x8x128xf32, #tpu.memory_space<vmem>>, vector<1x1x1x128xf32>
    %283 = vector.shape_cast %282 : vector<1x1x1x128xf32> to vector<1x128xf32>
    %cst_223 = arith.constant dense<0.000000e+00> : vector<16x128xf32>
    %284 = tpu.matmul %280, %209, %cst_223 {dimension_numbers = #tpu.dot_dimension_numbers<[1], [0], [0], [1], [0, 0, 1, 1], [], []>} : vector<16x32xbf16>, vector<32x128xbf16>, vector<16x128xf32> -> vector<16x128xf32>
    %285 = vector.broadcast %281 : vector<16x1xf32> to vector<16x128xf32>
    %286 = arith.addf %284, %285 : vector<16x128xf32>
    %287 = vector.broadcast %283 : vector<1x128xf32> to vector<16x128xf32>
    %288 = arith.mulf %286, %287 : vector<16x128xf32>
    %289 = arith.addf %279, %288 : vector<16x128xf32>
    %c0_224 = arith.constant 0 : index
    %c0_225 = arith.constant 0 : index
    %c0_226 = arith.constant 0 : index
    %290 = vector.load %arg10[%c0_224, %c0_225, %c0_226] : memref<1x16x128xf32, #tpu.memory_space<vmem>>, vector<1x16x128xf32>
    %291 = vector.shape_cast %290 : vector<1x16x128xf32> to vector<16x128xf32>
    %292 = vector.shape_cast %289 : vector<16x128xf32> to vector<1x16x128xf32>
    tpu.vector_store %arg10[%c0_224, %c0_225, %c0_226], %292 {strides = array<i32>} : memref<1x16x128xf32, #tpu.memory_space<vmem>>, vector<1x16x128xf32>,
    return
  }
  func.func @transform_0(%arg0: i32, %arg1: i32) -> (i32, i32, i32) {
    %c0_i32 = arith.constant 0 : i32
    %c0_i32_0 = arith.constant 0 : i32
    return %arg0, %c0_i32, %arg1 : i32, i32, i32
  }
  func.func @transform_1(%arg0: i32, %arg1: i32) -> (i32, i32, i32, i32) {
    %c0_i32 = arith.constant 0 : i32
    %c0_i32_0 = arith.constant 0 : i32
    %c0_i32_1 = arith.constant 0 : i32
    return %arg0, %c0_i32, %c0_i32_0, %arg1 : i32, i32, i32, i32
  }
  func.func @transform_2(%arg0: i32, %arg1: i32) -> (i32, i32) {
    %c0_i32 = arith.constant 0 : i32
    %c0_i32_0 = arith.constant 0 : i32
    %c0_i32_1 = arith.constant 0 : i32
    return %c0_i32, %c0_i32_0 : i32, i32
  }
  func.func @transform_3(%arg0: i32, %arg1: i32) -> (i32, i32) {
    %c0_i32 = arith.constant 0 : i32
    %c0_i32_0 = arith.constant 0 : i32
    %c0_i32_1 = arith.constant 0 : i32
    return %c0_i32, %c0_i32_0 : i32, i32
  }
  func.func @transform_4(%arg0: i32, %arg1: i32) -> (i32, i32) {
    %c0_i32 = arith.constant 0 : i32
    %c0_i32_0 = arith.constant 0 : i32
    %c0_i32_1 = arith.constant 0 : i32
    return %c0_i32, %c0_i32_0 : i32, i32
  }
  func.func @transform_5(%arg0: i32, %arg1: i32) -> (i32, i32) {
    %c0_i32 = arith.constant 0 : i32
    %c0_i32_0 = arith.constant 0 : i32
    %c0_i32_1 = arith.constant 0 : i32
    return %c0_i32, %c0_i32_0 : i32, i32
  }
  func.func @transform_6(%arg0: i32, %arg1: i32) -> (i32, i32) {
    %c0_i32 = arith.constant 0 : i32
    %c0_i32_0 = arith.constant 0 : i32
    %c0_i32_1 = arith.constant 0 : i32
    return %c0_i32, %c0_i32_0 : i32, i32
  }
  func.func @transform_7(%arg0: i32, %arg1: i32) -> (i32, i32) {
    %c0_i32 = arith.constant 0 : i32
    %c0_i32_0 = arith.constant 0 : i32
    %c0_i32_1 = arith.constant 0 : i32
    return %c0_i32, %c0_i32_0 : i32, i32
  }
  func.func @transform_8(%arg0: i32, %arg1: i32) -> (i32, i32, i32) {
    %c0_i32 = arith.constant 0 : i32
    %c0_i32_0 = arith.constant 0 : i32
    return %arg0, %c0_i32, %arg1 : i32, i32, i32
  }
}

</mosaic_0001>

<bundles_post_ra>
// kernel: tpu_custom_call.1
= control target key start
LH: loop header
LB: loop body
LE: loop exit
PB: predicated region body
PF: predicated region fallthrough
CT: control target
= control target key end

     0   :  { %13 = vsyncpa [#allocation3], 0  ;;  %s3812_s0 = inlined_call_operand.vmem [shape: f32[2,3,128], index: 0, kind: input, shape index: {}]   ;;  %s3813_s1 = inlined_call_operand.vmem [shape: f32[2,3,8,128], index: 1, kind: input, shape index: {}]   ;;  %s3814_s2 = inlined_call_operand.vmem [shape: f32[8,1], index: 2, kind: input, shape index: {}]   ;;  %s3815_s3 = inlined_call_operand.vmem [shape: f32[8,1], index: 3, kind: input, shape index: {}]   ;;  %s3816_s4 = inlined_call_operand.vmem [shape: bf16[32,8], index: 4, kind: input, shape index: {}]   ;;  %s3817_s5 = inlined_call_operand.vmem [shape: f32[32,1], index: 5, kind: input, shape index: {}]   ;;  %s3818_s6 = inlined_call_operand.vmem [shape: bf16[128,32], index: 6, kind: input, shape index: {}]   ;;  %s3819_s7 = inlined_call_operand.vmem [shape: f32[128,1], index: 7, kind: input, shape index: {}]   ;;  %s3820_s8 = inlined_call_operand.hbm [shape: f32[2,16,128], index: 8, kind: output, shape index: {}]  }
   0x1   :  { %15 = vsyncpa [#allocation3 + $0x1], 0  ;;  %s3057_s27 = smov 0   ;;  %s3059_s28 = smov 0  }
   0x2   :  { %s3061_s29 = smov 0   ;;  %s3063_s30 = smov 0  }
   0x3   :  { %s3065_s9 = smov 0   ;;  %s3067_s10 = smov 0  }
   0x4 LB: > { %s2415_s11 = sadd.s32 4294967295, %s2998_s10   ;;  %s2416_s12 = sadd.s32 4294967294, %s2998_s10   ;;  %s2998_s10 = sphi %s3067_s10, %s21_s10   ;;  %s2994_s9 = sphi %s3065_s9, %s3833_s9   ;;  %s2990_s30 = sphi %s3063_s30, %s3832_s30   ;;  %s2986_s29 = sphi %s3061_s29, %s3831_s29   ;;  %s2982_s28 = sphi %s3059_s28, %s3830_s28   ;;  %s2978_s27 = sphi %s3057_s27, %s3829_s27  }
   0x5   : > { %s33_s13 = sadd.s32 1, %s2994_s9  ;;  %s224_s14 = sadd.s32 1, %s2986_s29 }
   0x6   : > { %p35_p0 = scmp.ge.s32.totalorder %s33_s13, 2  ;;  %p234_p1 = scmp.ne.s32.totalorder %s2986_s29, %s2982_s28 }
   0x7   : > { %p235_p2 = scmp.eq.s32.totalorder %s2415_s11, 1  ;;  %p240_p3 = scmp.ne.s32.totalorder %s2982_s28, %s2978_s27 }
   0x8   : > { %s3835_s13 = smov (%p35_p0, %s33_s13), 0  ;;  %p241_p5 = scmp.eq.s32.totalorder %s2416_s12, 1 }
   0x9   : > { %p3097_p4 = por %p235_p2, %p234_p1  ;;  %s219_s16 = ssub.s32 %s2994_s9, %s3835_s13 }
   0xa   : > { %p2419_p6 = scmp.ge.s32.totalorder %s2998_s10, 1  ;;  %p222_p7 = scmp.eq.s32.totalorder %s219_s16, 0 }
   0xb   : > { %p3104_p8 = por %p241_p5, %p240_p3  ;;  %p298_p9 = scmp.lt.s32.totalorder %s2998_s10, 3 }
   0xc   : > { %s3110_s18 = scalar_select %p222_p7, %s2986_s29, %s224_s14  }
   0xd   : > { %p299_p10 = pnand %p2419_p6, %p298_p9 }
   0xe   : > { %p342_p11 = scmp.lt.s32.totalorder (!%p299_p10), %s2990_s30, 1  ;;  %s2523_s16 = sshll.u32 (!%p299_p10), %s2990_s30, 8 }
   0xf   : > { %302 = sbr.rel (%p299_p10) target bundleno = 1202 (0x4b2), region = 52 }
  0x14   : > { %v358_v0 = vld [vmem:[%s3814_s2] sm:$0xff]  ;;  %v3000_v1 = vmov 0   ;;  %v661_v5 = vld [vmem:[%s3819_s7 + $0x10] sm:$0xff]  ;;  %s3147_s14 = scalar_select %p342_p11, %s2990_s30, 1  ;;  %vm520_vm0 = vcmask 64512   ;;  %v367_v14 = vld [vmem:[%s3817_s5 + $0x18] sm:$0xff] }
  0x15   : > { %2897 = vset.pattern.permute.xlu0 %v3000_v1  ;;  %2898 = vset.pattern.permute.xlu1 %v3000_v1  ;;  %v359_v2 = vld [vmem:[%s3815_s3] sm:$0xff]  ;;  %v805_v7 = vld [vmem:[%s3819_s7 + $0x30] sm:$0xff]  ;;  %v365_v17 = vld [vmem:[%s3817_s5 + $0x8] sm:$0xff]  ;;  %v3001_v61 = vmov 683565275   ;;  %s3009_s30 = smov [#allocation2]  }
  0x16   : > { %375 = vperm.xlu0 %2897, %v358_v0   ;;  %v364_v3 = vld [vmem:[%s3817_s5] sm:$0xff]  ;;  %v949_v9 = vld [vmem:[%s3819_s7 + $0x50] sm:$0xff]  ;;  %s2421_s20 = sshll.u32 %s3147_s14, 2  ;;  %v589_v23 = vld [vmem:[%s3819_s7 + $0x8] sm:$0xff]  ;;  %v3002_v63 = vmov 2475754826  }
  0x17   : > { %v588_v4 = vld [vmem:[%s3819_s7] sm:$0xff]  ;;  %v1093_v11 = vld [vmem:[%s3819_s7 + $0x70] sm:$0xff]  ;;  %s348_s25 = scalar_lea.vmem %s3812_s0, %s2421_s20  ;;  %v662_v31 = vld [vmem:[%s3819_s7 + $0x18] sm:$0xff]  ;;  %s2818_s21 = smul.u32 24, %s3147_s14 }
  0x18   : > { %v733_v6 = vld [vmem:[%s3819_s7 + $0x20] sm:$0xff]  ;;  %v366_v13 = vld [vmem:[%s3817_s5 + $0x10] sm:$0xff]  ;;  %v734_v42 = vld [vmem:[%s3819_s7 + $0x28] sm:$0xff]  ;;  %s3763_s20 = scalar_lea.hbm %s3820_s8, %s2523_s16  ;;  %s2926_s14 = sshll.u32 %s3009_s30, 4  ;;  %s2927_s14 = int_to_ptr.vmem [resolvable:$false] %s2926_s14 }
  0x19   : > { %v877_v8 = vld [vmem:[%s3819_s7 + $0x40] sm:$0xff]  ;;  %502 = vperm.xlu1 %2898, %v366_v13   ;;  %v806_v51 = vld [vmem:[%s3819_s7 + $0x38] sm:$0xff]  ;;  %s3538_s23 = scalar_lea.vmem %s3813_s1, %s2818_s21  ;;  %s2928_s24 = scalar_lea.vmem %s2927_s14, 512 }
  0x1a   : > { %381 = vperm.xlu0 %2897, %v359_v2   ;;  %v1021_v10 = vld [vmem:[%s3819_s7 + $0x60] sm:$0xff]  ;;  %v878_v2 = vld [vmem:[%s3819_s7 + $0x48] sm:$0xff] }
  0x1b   : > { %v3152_v12 = vld [vmem:[%s3816_s4] sm:$0xff]  }
  0x1c   : > { %2607 = vmatprep.mubr.msk.bf16.mxu0 %vm520_vm0, %v3152_v12  ;;  %v2456_v15 = vld [vmem:[%s348_s25 + $0x1] ss:$0 sm:$0xff]  ;;  %v2487_v16 = vld [vmem:[%s348_s25 + $0x2] ss:$0 sm:$0xff]  ;;  %v2423_v19 = vld [vmem:[%s348_s25] ss:$0 sm:$0xff] }
  0x1d   : > { %507 = vperm.xlu1 %2898, %v367_v14   ;;  %s339_s25 = sand.u32 1, %s2982_s28  }
  0x1e   : > { %492 = vperm.xlu0 %2897, %v364_v3   ;;  %s2420_s26 = sshll.u32 %s339_s25, 4  ;;  %s3767_s22 = scalar_lea.sflag [#allocation3], %s339_s25 }
  0x1f   : > { %s341_s11 = scalar_lea.vmem [#allocation2], %s2420_s26 }
  0x20   : > { %s2322_s12 = sshll.u32 %s341_s11, 4  ;;  %s3758_s12 = int_to_ptr.vmem [resolvable:$true] %s2322_s12 }
  0x21   : > { %497 = vperm.xlu1 %2898, %v365_v17   ;;  %p2929_p1 = scmp.lt.s32.totalorder %s3758_s12, %s2927_s14 }
  0x22   : > { %593 = vperm.xlu0 %2897, %v588_v4   ;;  %v3003_v4 = vmov 2131351028  }
  0x25   : > { %598 = vperm.xlu1 %2898, %v589_v23  }
  0x26   : > { %666 = vperm.xlu0 %2897, %v661_v5  }
  0x29   : > { %671 = vperm.xlu1 %2898, %v662_v31  }
  0x2a   : > { %738 = vperm.xlu0 %2897, %v733_v6   ;;  %v3004_v6 = vmov 2102212464  }
  0x2d   : > { %743 = vperm.xlu1 %2898, %v734_v42  }
  0x2e   : > { %810 = vperm.xlu0 %2897, %v805_v7  }
  0x31   : > { %815 = vperm.xlu1 %2898, %v806_v51  }
  0x32   : > { %882 = vperm.xlu0 %2897, %v877_v8   ;;  %v3005_v8 = vmov 920167782  }
  0x35   : > { %887 = vperm.xlu1 %2898, %v878_v2  }
  0x36   : > { %954 = vperm.xlu0 %2897, %v949_v9  }
  0x3a   : > { %1026 = vperm.xlu0 %2897, %v1021_v10  }
  0x3e   : > { %1098 = vperm.xlu0 %2897, %v1093_v11  }
  0x91   : > { %v376_v18 = vpop.permute.xlu0 %375 }
  0x92   : > { %v1168_v20 = vmul.f32 %v2456_v15, %v376_v18  ;;  %v1739_v21 = vmul.f32 %v2487_v16, %v376_v18  ;;  %v378_v22 = vmul.f32 %v2423_v19, %v376_v18  ;;  %v3006_v16 = vmov 1326507024  }
  0x95   : > { %v382_v24 = vpop.permute.xlu0 %381 }
  0x96   : > { %v3172_v25 = vadd.f32 %v382_v24, %v378_v22  ;;  %v3174_v26 = vadd.f32 %v1168_v20, %v382_v24  ;;  %v3176_v27 = vadd.f32 %v1739_v21, %v382_v24  ;;  %v950_v21 = vld [vmem:[%s3819_s7 + $0x58] sm:$0xff] }
  0x97   : > { %959 = vperm.xlu1 %2898, %v950_v21  }
  0x98   : > { %v388_v28 = vand.u32 2139095040, %v3172_v25  ;;  %v1170_v29 = vand.u32 2147483647, %v3174_v26  ;;  %v1173_v30 = vand.u32 2139095040, %v3174_v26  ;;  %v1741_v32 = vand.u32 2147483647, %v3176_v27 }
  0x99   : > { %v1744_v33 = vand.u32 2139095040, %v3176_v27  ;;  %v385_v34 = vand.u32 2147483647, %v3172_v25 }
  0x9a   : > { %v389_v35 = vshrl.u32 %v388_v28, 23  ;;  %v1174_v36 = vshrl.u32 %v1173_v30, 23  ;;  %v1177_v37 = vand.u32 8388607, %v1170_v29  ;;  %v1748_v39 = vand.u32 8388607, %v1741_v32 }
  0x9b   : > { %v1745_v38 = vshrl.u32 %v1744_v33, 23  ;;  %v392_v44 = vand.u32 8388607, %v385_v34 }
  0x9c   : > { %v2424_v40 = vadd.s32 4294967169, %v389_v35  ;;  %v2457_v41 = vadd.s32 4294967169, %v1174_v36  ;;  %v1178_v47 = vor.u32 8388608, %v1177_v37  ;;  %v1749_v48 = vor.u32 8388608, %v1748_v39 }
  0x9d   : > { %v2488_v43 = vadd.s32 4294967169, %v1745_v38  ;;  %v393_v50 = vor.u32 8388608, %v392_v44 }
  0x9e   : > { %v395_v45 = vadd.s32 1, %v2424_v40  ;;  %v1180_v46 = vadd.s32 1, %v2457_v41  ;;  %v3204_v57 = vshll.u32 %v1178_v47, 8  ;;  %v3206_v58 = vshll.u32 %v1749_v48, 8 }
  0x9f   : > { %v1751_v49 = vadd.s32 1, %v2488_v43  ;;  %v3208_v59 = vshll.u32 %v393_v50, 8  ;;  %v1022_v43 = vld [vmem:[%s3819_s7 + $0x68] sm:$0xff] }
  0xa0   : > { %vm396_vm1 = vcmp.gt.s32.totalorder %v395_v45, 0  ;;  %vm1181_vm2 = vcmp.gt.s32.totalorder %v1180_v46, 0  ;;  %1031 = vperm.xlu1 %2898, %v1022_v43  }
  0xa1   : > { %v3199_v52 = vsel %vm396_vm1, %v395_v45, 0  ;;  %v1182_v53 = vsel %vm1181_vm2, %v1180_v46, 0  ;;  %vm1752_vm3 = vcmp.gt.s32.totalorder %v1751_v49, 0 }
  0xa2   : > { %v3202_v54 = vand.u32 31, %v3199_v52  ;;  %v1184_v55 = vand.u32 31, %v1182_v53  ;;  %v1183_v56 = vshrl.u32 %v1182_v53, 5  ;;  %v1753_v1 = vsel %vm1752_vm3, %v1751_v49, 0 }
  0xa3   : > { %v1755_v24 = vand.u32 31, %v1753_v1  ;;  %v1754_v42 = vshrl.u32 %v1753_v1, 5  ;;  %vm3335_vm3 = vcmp.le.f32.partialorder %v1170_v29, 0.7853982 }
  0xa4   : > { %v1185_v60 = vsub.s32 32, %v1184_v55  ;;  %v1187_v62 = vshll.u32 %v3001_v61, %v1184_v55  ;;  %v1190_v0 = vshll.u32 %v3002_v63, %v1184_v55  ;;  %v3216_v3 = vsub.s32 32, %v3202_v54 }
  0xa5   : > { %v1193_v5 = vshll.u32 %v3003_v4, %v1184_v55  ;;  %v1196_v7 = vshll.u32 %v3004_v6, %v1184_v55  ;;  %v1199_v9 = vshll.u32 %v3005_v8, %v1184_v55  ;;  %vm1202_vm4 = vcmp.lt.s32.totalorder %v1183_v56, 1 }
  0xa6   : > { %v1186_v10 = vshrl.u32 %v3001_v61, %v1185_v60  ;;  %v1188_v11 = vshrl.u32 %v3002_v63, %v1185_v60  ;;  %v1191_v13 = vshrl.u32 %v3003_v4, %v1185_v60  ;;  %v1194_v14 = vshrl.u32 %v3004_v6, %v1185_v60 }
  0xa7   : > { %v1197_v15 = vshrl.u32 %v3005_v8, %v1185_v60  ;;  %v1200_v17 = vshrl.u32 %v3006_v16, %v1185_v60  ;;  %vm1203_vm5 = vcmp.lt.s32.totalorder %v1183_v56, 2  ;;  %vm1204_vm6 = vcmp.lt.s32.totalorder %v1183_v56, 3 }
  0xa8   : > { %v1189_v18 = vor.u32 %v1188_v11, %v1187_v62  ;;  %v1192_v19 = vor.u32 %v1191_v13, %v1190_v0  ;;  %v1195_v20 = vor.u32 %v1194_v14, %v1193_v5  ;;  %vm1205_vm7 = vcmp.lt.s32.totalorder %v1183_v56, 4 }
  0xa9   : > { %v1198_v22 = vor.u32 %v1197_v15, %v1196_v7  ;;  %v1201_v23 = vor.u32 %v1200_v17, %v1199_v9  ;;  %v1756_v38 = vsub.s32 32, %v1755_v24  ;;  %v1758_v47 = vshll.u32 %v3001_v61, %v1755_v24 }
  0xaa   : > { %v1206_v28 = vsel %vm1202_vm4, %v1186_v10, %v1189_v18  ;;  %v1207_v30 = vsel %vm1205_vm7, %v1195_v20, 2102212464  ;;  %v1210_v31 = vsel %vm1202_vm4, %v1189_v18, %v1192_v19  ;;  %v1214_v33 = vsel %vm1202_vm4, %v1192_v19, %v1195_v20 }
  0xab   : > { %v1208_v35 = vsel %vm1204_vm6, %v1192_v19, %v1207_v30  ;;  %v1211_v36 = vsel %vm1205_vm7, %v1198_v22, 920167782  ;;  %v1215_v37 = vsel %vm1205_vm7, %v1201_v23, 1326507024  ;;  %v1757_v53 = vshrl.u32 %v3001_v61, %v1756_v38 }
  0xac   : > { %v1209_v39 = vsel %vm1203_vm5, %v1206_v28, %v1208_v35  ;;  %v1212_v40 = vsel %vm1204_vm6, %v1195_v20, %v1211_v36  ;;  %v1216_v41 = vsel %vm1204_vm6, %v1198_v22, %v1215_v37  ;;  %v1759_v55 = vshrl.u32 %v3002_v63, %v1756_v38 }
  0xad   : > { %v1213_v44 = vsel %vm1203_vm5, %v1210_v31, %v1212_v40  ;;  %v1217_v45 = vsel %vm1203_vm5, %v1214_v33, %v1216_v41  ;;  %v1225_v46 = vmul.u32 %v3204_v57, %v1209_v39  ;;  %v1761_v60 = vshll.u32 %v3002_v63, %v1755_v24 }
  0xae   : > { %v3242_v48 = vmul.u32.u64.low %v3204_v57, %v1217_v45  ;;  %v3243_v49 = vmul.u32.u64.high %v3204_v57, %v1217_v45, %v3242_v48  ;;  %v3246_v50 = vmul.u32.u64.low %v3204_v57, %v1213_v44  ;;  %v3247_v51 = vmul.u32.u64.high %v3204_v57, %v1213_v44, %v3246_v50  ;;  %v1094_v57 = vld [vmem:[%s3819_s7 + $0x78] sm:$0xff] }
  0xaf   : > { %v1762_v56 = vshrl.u32 %v3003_v4, %v1756_v38  ;;  %v1764_v62 = vshll.u32 %v3003_v4, %v1755_v24  ;;  %v1765_v0 = vshrl.u32 %v3004_v6, %v1756_v38  ;;  %v1767_v1 = vshll.u32 %v3004_v6, %v1755_v24  ;;  %1103 = vperm.xlu1 %2898, %v1094_v57  }
  0xb0   : > { %v1768_v2 = vshrl.u32 %v3005_v8, %v1756_v38  ;;  %v1760_v5 = vor.u32 %v1759_v55, %v1758_v47  ;;  %v1770_v9 = vshll.u32 %v3005_v8, %v1755_v24  ;;  %v1771_v10 = vshrl.u32 %v3006_v16, %v1756_v38 }
  0xb1   : > { %v1763_v7 = vor.u32 %v1762_v56, %v1761_v60  ;;  %v3263_v11 = vadd.s32 %v3246_v50, %v3243_v49  ;;  %vm1227_vm8 = vc.u32 %v3243_v49, %v3246_v50  ;;  %v1228_v13 = vadd.s32 1, %v3247_v51 }
  0xb2   : > { %v1766_v14 = vor.u32 %v1765_v0, %v1764_v62  ;;  %v1769_v15 = vor.u32 %v1768_v2, %v1767_v1  ;;  %v1772_v17 = vor.u32 %v1771_v10, %v1770_v9  ;;  %vm1773_vm9 = vcmp.lt.s32.totalorder %v1754_v42, 1 }
  0xb3   : > { %vm1775_vm10 = vcmp.lt.s32.totalorder %v1754_v42, 3  ;;  %v1229_v18 = vsel %vm1227_vm8, %v1228_v13, %v3247_v51  ;;  %vm1776_vm11 = vcmp.lt.s32.totalorder %v1754_v42, 4  ;;  %v1777_v19 = vsel %vm1773_vm9, %v1757_v53, %v1760_v5 }
  0xb4   : > { %v1781_v20 = vsel %vm1773_vm9, %v1760_v5, %v1763_v7  ;;  %v1230_v21 = vadd.s32 %v1229_v18, %v1225_v46  ;;  %v1778_v22 = vsel %vm1776_vm11, %v1766_v14, 2102212464  ;;  %v1782_v23 = vsel %vm1776_vm11, %v1769_v15, 920167782 }
  0xb5   : > { %v1785_v24 = vsel %vm1773_vm9, %v1763_v7, %v1766_v14  ;;  %vm1774_vm12 = vcmp.lt.s32.totalorder %v1754_v42, 2  ;;  %v1779_v28 = vsel %vm1775_vm10, %v1763_v7, %v1778_v22  ;;  %v1783_v30 = vsel %vm1775_vm10, %v1766_v14, %v1782_v23 }
  0xb6   : > { %v1786_v31 = vsel %vm1776_vm11, %v1772_v17, 1326507024  ;;  %v1231_v33 = vadd.s32 536870912, %v1230_v21  ;;  %v1780_v35 = vsel %vm1774_vm12, %v1777_v19, %v1779_v28  ;;  %v1784_v36 = vsel %vm1774_vm12, %v1781_v20, %v1783_v30 }
  0xb7   : > { %v1787_v37 = vsel %vm1775_vm10, %v1769_v15, %v1786_v31  ;;  %v3272_v38 = vshrl.u32 %v3199_v52, 5  ;;  %v3275_v40 = vmul.u32.u64.low %v3206_v58, %v1784_v36  ;;  %v3276_v41 = vmul.u32.u64.high %v3206_v58, %v1784_v36, %v3275_v40 }
  0xb8   : > { %v1788_v39 = vsel %vm1774_vm12, %v1785_v24, %v1787_v37  ;;  %v1232_v43 = vshrl.u32 %v1231_v33, 30  ;;  %v1796_v46 = vmul.u32 %v3206_v58, %v1780_v35  ;;  %v402_v47 = vshll.u32 %v3001_v61, %v3202_v54 }
  0xb9   : > { %v3279_v44 = vmul.u32.u64.low %v3206_v58, %v1788_v39  ;;  %v3280_v45 = vmul.u32.u64.high %v3206_v58, %v1788_v39, %v3279_v44  ;;  %v403_v42 = vshrl.u32 %v3002_v63, %v3216_v3  ;;  %v405_v52 = vshll.u32 %v3002_v63, %v3202_v54 }
  0xba   : > { %v406_v48 = vshrl.u32 %v3003_v4, %v3216_v3  ;;  %v1233_v49 = vshll.u32 %v1232_v43, 30  ;;  %v408_v50 = vshll.u32 %v3003_v4, %v3202_v54  ;;  %v409_v51 = vshrl.u32 %v3004_v6, %v3216_v3 }
  0xbb   : > { %v412_v58 = vshrl.u32 %v3005_v8, %v3216_v3  ;;  %v1799_v53 = vadd.s32 1, %v3276_v41  ;;  %v404_v55 = vor.u32 %v403_v42, %v402_v47  ;;  %v411_v63 = vshll.u32 %v3004_v6, %v3202_v54 }
  0xbc   : > { %v407_v60 = vor.u32 %v406_v48, %v405_v52  ;;  %v1234_v56 = vsub.s32 %v1230_v21, %v1233_v49  ;;  %v3301_v62 = vadd.s32 %v3275_v40, %v3280_v45  ;;  %vm1798_vm13 = vc.u32 %v3280_v45, %v3275_v40 }
  0xbd   : > { %v410_v4 = vor.u32 %v409_v51, %v408_v50  ;;  %v1800_v0 = vsel %vm1798_vm13, %v1799_v53, %v3276_v41  ;;  %v413_v1 = vor.u32 %v412_v58, %v411_v63  ;;  %v414_v2 = vshll.u32 %v3005_v8, %v3202_v54 }
  0xbe   : > { %v415_v57 = vshrl.u32 %v3006_v16, %v3216_v3  ;;  %v1236_v5 = vsub.s32 0, %v1234_v56  ;;  %v1801_v7 = vadd.s32 %v1800_v0, %v1796_v46  ;;  %v401_v6 = vshrl.u32 %v3001_v61, %v3216_v3 }
  0xbf   : > { %vm417_vm14 = vcmp.lt.s32.totalorder %v3272_v38, 1  ;;  %vm419_vm15 = vcmp.lt.s32.totalorder %v3272_v38, 3  ;;  %vm420_vm1 = vcmp.lt.s32.totalorder %v3272_v38, 4  ;;  %vm418_vm2 = vcmp.lt.s32.totalorder %v3272_v38, 2 }
  0xc0   : > { %v416_v9 = vor.u32 %v415_v57, %v414_v2  ;;  %v425_v10 = vsel %vm417_vm14, %v404_v55, %v407_v60  ;;  %v2458_v13 = vmin.u32 %v1236_v5, %v1234_v56  ;;  %v1802_v14 = vadd.s32 536870912, %v1801_v7 }
  0xc1   : > { %v422_v15 = vsel %vm420_vm1, %v410_v4, 2102212464  ;;  %v426_v54 = vsel %vm420_vm1, %v413_v1, 920167782  ;;  %v429_v16 = vsel %vm417_vm14, %v407_v60, %v410_v4  ;;  %v421_v18 = vsel %vm417_vm14, %v401_v6, %v404_v55 }
  0xc2   : > { %v427_v8 = vsel %vm419_vm15, %v410_v4, %v426_v54  ;;  %v430_v17 = vsel %vm420_vm1, %v416_v9, 1326507024  ;;  %v1238_v61 = vclz %v2458_v13  ;;  %v3317_v3 = vshrl.u32 %v1802_v14, 30 }
  0xc3   : > { %v428_v19 = vsel %vm418_vm2, %v425_v10, %v427_v8  ;;  %v423_v20 = vsel %vm419_vm15, %v407_v60, %v422_v15  ;;  %v431_v21 = vsel %vm419_vm15, %v413_v1, %v430_v17  ;;  %v1256_v31 = vsub.s32 4, %v1232_v43 }
  0xc4   : > { %v3326_v22 = vmul.u32.u64.low %v3208_v59, %v428_v19  ;;  %v3327_v23 = vmul.u32.u64.high %v3208_v59, %v428_v19, %v3326_v22  ;;  %v2459_v24 = vadd.s32 4294967294, %v1238_v61  ;;  %v1804_v28 = vshll.u32 %v3317_v3, 30 }
  0xc5   : > { %v432_v30 = vsel %vm418_vm2, %v429_v16, %v431_v21  ;;  %vm1172_vm4 = vcmp.lt.s32.totalorder %v3174_v26, 0  ;;  %v424_v39 = vsel %vm418_vm2, %v421_v18, %v423_v20  ;;  %vm1743_vm9 = vcmp.lt.s32.totalorder %v3176_v27, 0 }
  0xc6   : > { %v3341_v35 = vmul.u32.u64.low %v3208_v59, %v432_v30  ;;  %v3342_v36 = vmul.u32.u64.high %v3208_v59, %v432_v30, %v3341_v35  ;;  %vm2460_vm5 = vcmp.lt.s32.totalorder %v2459_v24, 0  ;;  %v1805_v37 = vsub.s32 %v1801_v7, %v1804_v28 }
  0xc7   : > { %v1257_v40 = vsel %vm1172_vm4, %v1256_v31, %v1232_v43  ;;  %v1241_v41 = vsel %vm2460_vm5, 0, %v2459_v24  ;;  %v443_v29 = vadd.s32 1, %v3327_v23  ;;  %v440_v52 = vmul.u32 %v3208_v59, %v424_v39 }
  0xc8   : > { %v1259_v44 = vsel %vm3335_vm3, 0, %v1257_v40  ;;  %v1242_v45 = vsub.s32 32, %v1241_v41  ;;  %v1246_v46 = vsub.s32 4294967266, %v1241_v41  ;;  %v1807_v47 = vsub.s32 0, %v1805_v37 }
  0xc9   : > { %v1243_v42 = vshll.u32 %v1234_v56, %v1241_v41  ;;  %vm442_vm6 = vc.u32 %v3342_v36, %v3326_v22  ;;  %v1827_v24 = vsub.s32 4, %v3317_v3  ;;  %v441_v28 = vadd.s32 %v3326_v22, %v3342_v36 }
  0xca   : > { %v1244_v38 = vshrl.u32 %v3263_v11, %v1242_v45  ;;  %v1247_v48 = vadd.s32 127, %v1246_v46  ;;  %v2489_v49 = vmin.u32 %v1807_v47, %v1805_v37  ;;  %v444_v43 = vsel %vm442_vm6, %v443_v29, %v3327_v23 }
  0xcb   : > { %v445_v50 = vadd.s32 %v444_v43, %v440_v52  ;;  %v1263_v33 = vadd.s32 3, %v1259_v44  ;;  %vm3371_vm10 = vcmp.le.f32.partialorder %v1741_v32, 0.7853982  ;;  %v1828_v22 = vsel %vm1743_vm9, %v1827_v24, %v3317_v3 }
  0xcc   : > { %v1245_v51 = vor.u32 %v1244_v38, %v1243_v42  ;;  %v1248_v58 = vshll.u32 %v1247_v48, 23  ;;  %v1809_v53 = vclz %v2489_v49  ;;  %v1830_v52 = vsel %vm3371_vm10, 0, %v1828_v22 }
  0xcd   : > { %v446_v55 = vadd.s32 536870912, %v445_v50  ;;  %v1264_v45 = vand.u32 3, %v1263_v33  ;;  %vm1262_vm14 = vweird.f32 %v3174_v26  ;;  %vm387_vm15 = vcmp.lt.s32.totalorder %v3172_v25, 0 }
  0xce   : > { %v1249_v60 = vor.u32 4788187, %v1248_v58  ;;  %v2490_v63 = vadd.s32 4294967294, %v1809_v53  ;;  %v1252_v59 = vcvt.s32.f32 %v1245_v51  ;;  %v1834_v51 = vadd.s32 3, %v1830_v52  ;;  %v3482_v52 = vld [vmem:[%s3818_s6 + $0x28] sm:$0xff]  }
  0xcf   : > { %v3356_v4 = vshrl.u32 %v446_v55, 30  ;;  %vm1269_vm11 = vcmp.eq.s32.totalorder %v1264_v45, 2  ;;  %vm1266_vm12 = vcmp.eq.s32.totalorder %v1264_v45, 0  ;;  %vm1265_vm13 = vcmp.lt.s32.totalorder %v1264_v45, 2  ;;  %v3433_v45 = vld [vmem:[%s3818_s6] sm:$0xff]  }
  0xd0   : > { %v1250_v56 = vand.u32 2147483647, %v1249_v60  ;;  %vm2491_vm7 = vcmp.lt.s32.totalorder %v2490_v63, 0  ;;  %vm3388_vm1 = vcmp.le.f32.partialorder %v385_v34, 0.7853982 }
  0xd1   : > { %v1812_v0 = vsel %vm2491_vm7, 0, %v2490_v63  ;;  %v448_v1 = vshll.u32 %v3356_v4, 30  ;;  %v471_v60 = vsub.s32 4, %v3356_v4 }
  0xd2   : > { %v1253_v11 = vmul.f32 %v1252_v59, %v1250_v56  ;;  %v1813_v2 = vsub.s32 32, %v1812_v0  ;;  %v1817_v57 = vsub.s32 4294967266, %v1812_v0  ;;  %v1814_v6 = vshll.u32 %v1805_v37, %v1812_v0 }
  0xd3   : > { %v449_v5 = vsub.s32 %v445_v50, %v448_v1  ;;  %v1835_v59 = vand.u32 3, %v1834_v51 }
  0xd4   : > { %v1254_v7 = vxor.u32 2147483648, %v1253_v11  ;;  %v1815_v9 = vshrl.u32 %v3301_v62, %v1813_v2  ;;  %v1818_v10 = vadd.s32 127, %v1817_v57 }
  0xd5   : > { %v451_v13 = vsub.s32 0, %v449_v5  ;;  %vm1840_vm2 = vcmp.eq.s32.totalorder %v1835_v59, 2 }
  0xd6   : > { %v1255_v14 = vsel %vm1172_vm4, %v1254_v7, %v1253_v11  ;;  %v1816_v15 = vor.u32 %v1815_v9, %v1814_v6  ;;  %v1819_v54 = vshll.u32 %v1818_v10, 23  ;;  %v472_v11 = vsel %vm387_vm15, %v471_v60, %v3356_v4  ;;  %v2434_v60 = vld [vmem:[%s3538_s23] ss:$0 sm:$0xff] }
  0xd7   : > { %v1258_v8 = vsel %vm3335_vm3, %v3174_v26, %v1255_v14  ;;  %v2425_v16 = vmin.u32 %v451_v13, %v449_v5  ;;  %vm1837_vm3 = vcmp.eq.s32.totalorder %v1835_v59, 0  ;;  %vm1836_vm4 = vcmp.lt.s32.totalorder %v1835_v59, 2 }
  0xd8   : > { %2909 = vcosq.f32 %v1258_v8  ;;  %v1820_v17 = vor.u32 4788187, %v1819_v54  ;;  %v1823_v19 = vcvt.s32.f32 %v1816_v15 }
  0xd9   : > { %2911 = vsinq.f32 %v1258_v8  ;;  %v453_v61 = vclz %v2425_v16 }
  0xda   : > { %v1821_v18 = vand.u32 2147483647, %v1820_v17 }
  0xdb   : > { %v2426_v20 = vadd.s32 4294967294, %v453_v61 }
  0xdc   : > { %v1824_v62 = vmul.f32 %v1823_v19, %v1821_v18  ;;  %v3406_v19 = vld [vmem:[%s3816_s4 + $0x8] sm:$0xff]  }
  0xdd   : > { %vm2427_vm8 = vcmp.lt.s32.totalorder %v2426_v20, 0 }
  0xde   : > { %v1825_v21 = vxor.u32 2147483648, %v1824_v62  ;;  %v456_v23 = vsel %vm2427_vm8, 0, %v2426_v20  ;;  %vm477_vm8 = vweird.f32 %v3172_v25  ;;  %v3007_v20 = vmov 0.0  }
  0xdf   : > { %v457_v30 = vsub.s32 32, %v456_v23  ;;  %v461_v31 = vsub.s32 4294967266, %v456_v23  ;;  %v458_v40 = vshll.u32 %v449_v5, %v456_v23  ;;  %v474_v5 = vsel %vm3388_vm1, 0, %v472_v11  ;;  %2611 = vmatprep.subr.bf16.mxu1 %v3007_v20 }
  0xe0   : > { %v1826_v37 = vsel %vm1743_vm9, %v1825_v21, %v1824_v62  ;;  %v478_v9 = vadd.s32 3, %v474_v5  ;;  %vm527_vm9 = vcmask 1043456  }
  0xe1   : > { %v1829_v39 = vsel %vm3371_vm10, %v3176_v27, %v1826_v37  ;;  %v459_v41 = vshrl.u32 %v441_v28, %v457_v30  ;;  %v462_v29 = vadd.s32 127, %v461_v31  ;;  %vm3008_vm10 = vmmov 0   ;;  %v3421_v30 = vpop.permute.xlu0 %492 }
  0xe2   : > { %2913 = vcosq.f32 %v1829_v39  ;;  %v479_v10 = vand.u32 3, %v478_v9  ;;  %2615 = vmatprep.mubr.msk.bf16.mxu1 %vm3008_vm10, %v3007_v20 }
  0xe3   : > { %2915 = vsinq.f32 %v1829_v39  ;;  %v460_v36 = vor.u32 %v459_v41, %v458_v40  ;;  %v463_v44 = vshll.u32 %v462_v29, 23 }
  0xe4   : > { %vm484_vm5 = vcmp.eq.s32.totalorder %v479_v10, 2  ;;  %vm481_vm6 = vcmp.eq.s32.totalorder %v479_v10, 0  ;;  %vm480_vm7 = vcmp.lt.s32.totalorder %v479_v10, 2 }
  0xe5   : > { %v2910_v46 = vpop.eup %2909  ;;  %v464_v32 = vor.u32 4788187, %v463_v44  ;;  %v467_v48 = vcvt.s32.f32 %v460_v36 }
  0xe6   : > { %v2912_v47 = vpop.eup %2911  ;;  %v1270_v42 = vxor.u32 2147483648, %v2910_v46 }
  0xe7   : > { %v465_v38 = vand.u32 2147483647, %v464_v32  ;;  %v1267_v49 = vxor.u32 2147483648, %v2912_v47  ;;  %v3455_v32 = vld [vmem:[%s3818_s6 + $0x10] sm:$0xff]  }
  0xe8   : > { %v1271_v43 = vsel %vm1269_vm11, %v1270_v42, %v2912_v47  ;;  %vm606_vm11 = vcmask 261120   ;;  %v3460_v47 = vld [vmem:[%s3818_s6 + $0x18] sm:$0xff]   ;;  %v3477_v42 = vld [vmem:[%s3818_s6 + $0x20] sm:$0xff]  }
  0xe9   : > { %v468_v50 = vmul.f32 %v467_v48, %v465_v38  ;;  %v1268_v3 = vsel %vm1266_vm12, %v2910_v46, %v1267_v49  ;;  %v3438_v46 = vld [vmem:[%s3818_s6 + $0x8] sm:$0xff]   ;;  %v3501_v48 = vld [vmem:[%s3818_s6 + $0x30] sm:$0xff]   ;;  %v3506_v49 = vld [vmem:[%s3818_s6 + $0x38] sm:$0xff]   ;;  %vm1833_vm12 = vweird.f32 %v3176_v27 }
  0xea   : > { %v1272_v58 = vsel %vm1265_vm13, %v1268_v3, %v1271_v43 }
  0xeb   : > { %v469_v53 = vxor.u32 2147483648, %v468_v50  ;;  %v3382_v55 = vsel %vm1262_vm14, nan, %v1272_v58 }
  0xec   : > { %v1274_v38 = vpack.c.bf16 %v3382_v55, %v3382_v55 }
  0xed   : > { %v470_v56 = vsel %vm387_vm15, %v469_v53, %v468_v50  ;;  %v3524_v50 = vpop.permute.xlu0 %593 }
  0xee   : > { %v473_v26 = vsel %vm3388_vm1, %v3172_v25, %v470_v56  ;;  %v3416_v25 = vpop.permute.xlu1 %502  ;;  %v1276_v43 = vsel %vm527_vm9, %v1274_v38, 0  ;;  %v2437_v56 = vld [vmem:[%s3538_s23 + $0x1] ss:$0 sm:$0xff] }
  0xef   : > { %v2914_v0 = vpop.eup %2913  ;;  %2917 = vcosq.f32 %v473_v26 }
  0xf0   : > { %v2916_v1 = vpop.eup %2915  ;;  %2919 = vsinq.f32 %v473_v26  ;;  %v1841_v2 = vxor.u32 2147483648, %v2914_v0 }
  0xf1   : > { %v1838_v57 = vxor.u32 2147483648, %v2916_v1  ;;  %v3528_v51 = vpop.permute.xlu0 %666 }
  0xf2   : > { %v1842_v34 = vsel %vm1840_vm2, %v1841_v2, %v2916_v1  ;;  %v3418_v62 = vpop.permute.xlu1 %507 }
  0xf3   : > { %v1839_v7 = vsel %vm1837_vm3, %v2914_v0, %v1838_v57 }
  0xf4   : > { %v3398_v6 = vsel %vm1836_vm4, %v1839_v7, %v1842_v34 }
  0xf6   : > { %v3424_v33 = vpop.permute.xlu1 %497 }
  0xfa   : > { %v3526_v3 = vpop.permute.xlu1 %598 }
  0xfc   : > { %v2918_v13 = vpop.eup %2917 }
  0xfd   : > { %v2920_v14 = vpop.eup %2919  ;;  %v485_v15 = vxor.u32 2147483648, %v2918_v13 }
  0xfe   : > { %v482_v54 = vxor.u32 2147483648, %v2920_v14  ;;  %v3530_v58 = vpop.permute.xlu1 %671 }
  0xff   : > { %v486_v4 = vsel %vm484_vm5, %v485_v15, %v2920_v14 }
 0x100   : > { %v483_v8 = vsel %vm481_vm6, %v2918_v13, %v482_v54 }
 0x101   : > { %v487_v16 = vsel %vm480_vm7, %v483_v8, %v486_v4 }
 0x102   : > { %v488_v17 = vsel %vm477_vm8, nan, %v487_v16  ;;  %v3540_v53 = vpop.permute.xlu1 %743  ;;  %v2440_v16 = vld [vmem:[%s3538_s23 + $0x2] ss:$0 sm:$0xff] }
 0x103   : > { %v489_v61 = vpack.c.bf16 %v488_v17, %v488_v17 }
 0x105   : > { %2815 = vmatprep.subr.msk.bf16.mxu0 %vm527_vm9, %v489_v61  ;;  %v529_v18 = vsel %vm527_vm9, %v489_v61, 0  ;;  %v2443_v61 = vld [vmem:[%s3538_s23 + $0x3] ss:$0 sm:$0xff] }
 0x106   : > { %2606 = vmatpush3.bf16.msra.mxu0 %v529_v18  ;;  %v3548_v2 = vpop.permute.xlu1 %815 }
 0x107   : > { %2619 = vmatprep.subr.bf16.mxu0 %v3007_v20 }
 0x109   : > { %2608 = vmatmul.mubr.msk.bf16.vlgmr.msra.gmra.mxu0 %vm520_vm0, %v3406_v19 }
 0x10a   : > { %2623 = vmatprep.mubr.msk.bf16.mxu0 %vm3008_vm10, %v3007_v20 }
 0x1c9   : > { %v2609_v21 = vpop.f32.mrf.mxu0 }
 0x1ca   : > { %v574_v24 = vadd.f32 %v2609_v21, %v3416_v25  ;;  %v3556_v21 = vpop.permute.xlu1 %887 }
 0x1cb   : > { %v565_v23 = vpop.f32.mrf.mxu0 }
 0x1cc   : > { %v582_v37 = vmax.f32 %v574_v24, 0.0  ;;  %v566_v39 = vadd.f32 %v565_v23, %v3421_v30 }
 0x1cd   : > { %v2610_v28 = vpop.f32.mrf.mxu0 }
 0x1ce   : > { %v577_v31 = vadd.f32 %v2610_v28, %v3418_v62  ;;  %v580_v36 = vmax.f32 %v566_v39, 0.0 }
 0x1cf   : > { %v568_v35 = vpop.f32.mrf.mxu0 }
 0x1d0   : > { %v583_v40 = vmax.f32 %v577_v31, 0.0  ;;  %v569_v41 = vadd.f32 %v568_v35, %v3424_v33 }
 0x1d2   : > { %v585_v29 = vpack.c.bf16 %v583_v40, %v582_v37  ;;  %v581_v22 = vmax.f32 %v569_v41, 0.0 }
 0x1d4   : > { %2612 = vmatpush3.bf16.msra.mxu1 %v585_v29  ;;  %2620 = vmatpush3.bf16.msra.mxu0 %v585_v29  ;;  %v584_v44 = vpack.c.bf16 %v581_v22, %v580_v36 }
 0x1d5   : > { %2613 = vmatprep.subr.bf16.mxu1 %v3007_v20  ;;  %2621 = vmatprep.subr.bf16.mxu0 %v3007_v20 }
 0x1d8   : > { %2614 = vmatpush3.bf16.msra.mxu1 %v584_v44  ;;  %2622 = vmatpush3.bf16.msra.mxu0 %v584_v44 }
 0x1d9   : > { %2627 = vmatprep.subr.bf16.mxu1 %v3007_v20  ;;  %2635 = vmatprep.subr.bf16.mxu0 %v3007_v20 }
 0x1db   : > { %2616 = vmatmul.mubr.msk.bf16.vlgmr.msra.gmra.mxu1 %vm606_vm11, %v3433_v45  ;;  %2624 = vmatmul.mubr.msk.bf16.vlgmr.msra.gmra.mxu0 %vm606_vm11, %v3438_v46 }
 0x1dc   : > { %2628 = vmatpush3.bf16.msra.mxu1 %v585_v29  ;;  %2636 = vmatpush3.bf16.msra.mxu0 %v585_v29 }
 0x1dd   : > { %2629 = vmatprep.subr.bf16.mxu1 %v3007_v20  ;;  %2637 = vmatprep.subr.bf16.mxu0 %v3007_v20 }
 0x1de   : > { %2631 = vmatprep.mubr.msk.bf16.mxu1 %vm3008_vm10, %v3007_v20  ;;  %2639 = vmatprep.mubr.msk.bf16.mxu0 %vm3008_vm10, %v3007_v20 }
 0x1e0   : > { %2630 = vmatpush3.bf16.msra.mxu1 %v584_v44  ;;  %2638 = vmatpush3.bf16.msra.mxu0 %v584_v44 }
 0x1e1   : > { %2643 = vmatprep.subr.bf16.mxu1 %v3007_v20  ;;  %2651 = vmatprep.subr.bf16.mxu0 %v3007_v20 }
 0x1e3   : > { %2632 = vmatmul.mubr.msk.bf16.vlgmr.msra.gmra.mxu1 %vm606_vm11, %v3455_v32  ;;  %2640 = vmatmul.mubr.msk.bf16.vlgmr.msra.gmra.mxu0 %vm606_vm11, %v3460_v47 }
 0x1e4   : > { %2644 = vmatpush3.bf16.msra.mxu1 %v585_v29  ;;  %2652 = vmatpush3.bf16.msra.mxu0 %v585_v29 }
 0x1e5   : > { %2645 = vmatprep.subr.bf16.mxu1 %v3007_v20  ;;  %2653 = vmatprep.subr.bf16.mxu0 %v3007_v20 }
 0x1e6   : > { %2647 = vmatprep.mubr.msk.bf16.mxu1 %vm3008_vm10, %v3007_v20  ;;  %2655 = vmatprep.mubr.msk.bf16.mxu0 %vm3008_vm10, %v3007_v20 }
 0x1e8   : > { %2646 = vmatpush3.bf16.msra.mxu1 %v584_v44  ;;  %2654 = vmatpush3.bf16.msra.mxu0 %v584_v44 }
 0x1e9   : > { %2659 = vmatprep.subr.bf16.mxu1 %v3007_v20  ;;  %2667 = vmatprep.subr.bf16.mxu0 %v3007_v20 }
 0x1eb   : > { %2648 = vmatmul.mubr.msk.bf16.vlgmr.msra.gmra.mxu1 %vm606_vm11, %v3477_v42  ;;  %2656 = vmatmul.mubr.msk.bf16.vlgmr.msra.gmra.mxu0 %vm606_vm11, %v3482_v52 }
 0x1ec   : > { %2660 = vmatpush3.bf16.msra.mxu1 %v585_v29  ;;  %2668 = vmatpush3.bf16.msra.mxu0 %v585_v29 }
 0x1ed   : > { %2661 = vmatprep.subr.bf16.mxu1 %v3007_v20  ;;  %2669 = vmatprep.subr.bf16.mxu0 %v3007_v20 }
 0x1ee   : > { %2663 = vmatprep.mubr.msk.bf16.mxu1 %vm3008_vm10, %v3007_v20  ;;  %2671 = vmatprep.mubr.msk.bf16.mxu0 %vm3008_vm10, %v3007_v20 }
 0x1f0   : > { %2662 = vmatpush3.bf16.msra.mxu1 %v584_v44  ;;  %2670 = vmatpush3.bf16.msra.mxu0 %v584_v44 }
 0x1f1   : > { %2816 = vmatprep.subr.msk.bf16.mxu1 %vm527_vm9, %v1274_v38  ;;  %2681 = vmatprep.subr.bf16.mxu0 %v3007_v20 }
 0x1f3   : > { %2664 = vmatmul.mubr.msk.bf16.vlgmr.msra.gmra.mxu1 %vm606_vm11, %v3501_v48  ;;  %2672 = vmatmul.mubr.msk.bf16.vlgmr.msra.gmra.mxu0 %vm606_vm11, %v3506_v49 }
 0x1f4   : > { %2676 = vmatpush3.bf16.msra.mxu1 %v1276_v43  ;;  %2677 = vmatprep.mubr.msk.bf16.mxu1 %vm520_vm0, %v3152_v12  ;;  %v3533_v12 = vpop.permute.xlu0 %738 }
 0x1f5   : > { %2689 = vmatprep.subr.bf16.mxu1 %v3007_v20  ;;  %2685 = vmatprep.mubr.msk.bf16.mxu0 %vm3008_vm10, %v3007_v20 }
 0x1f8   : > { %v3542_v55 = vpop.permute.xlu0 %810 }
 0x1fb   : > { %2678 = vmatmul.mubr.msk.bf16.vlgmr.msra.gmra.mxu1 %vm520_vm0, %v3406_v19 }
 0x1fc   : > { %2693 = vmatprep.mubr.msk.bf16.mxu1 %vm3008_vm10, %v3007_v20  ;;  %v3550_v9 = vpop.permute.xlu0 %882 }
 0x200   : > { %v3560_v37 = vpop.permute.xlu0 %954 }
 0x29b   : > { %v644_v63 = vpop.f32.mrf.mxu1  ;;  %v716_v59 = vpop.f32.mrf.mxu0 }
 0x29c   : > { %v645_v26 = vadd.f32 %v644_v63, %v3524_v50  ;;  %v717_v0 = vadd.f32 %v716_v59, %v3528_v51 }
 0x29d   : > { %v2617_v1 = vpop.f32.mrf.mxu1  ;;  %v2625_v11 = vpop.f32.mrf.mxu0 }
 0x29e   : > { %v655_v57 = vmul.f32 %v2434_v60, %v645_v26  ;;  %v727_v34 = vmul.f32 %v2437_v56, %v717_v0  ;;  %v2446_v26 = vld [vmem:[%s3538_s23 + $0x4] ss:$0 sm:$0xff]  ;;  %v2449_v1 = vld [vmem:[%s3538_s23 + $0x5] ss:$0 sm:$0xff] }
 0x29f   : > { %v647_v5 = vpop.f32.mrf.mxu1  ;;  %v719_v7 = vpop.f32.mrf.mxu0 }
 0x2a0   : > { %v729_v10 = vadd.f32 %v727_v34, %v655_v57  ;;  %v648_v13 = vadd.f32 %v647_v5, %v3526_v3  ;;  %v720_v14 = vadd.f32 %v719_v7, %v3530_v58  ;;  %v3568_v57 = vpop.permute.xlu0 %1026 }
 0x2a1   : > { %v2618_v15 = vpop.f32.mrf.mxu1  ;;  %v2626_v54 = vpop.f32.mrf.mxu0 }
 0x2a2   : > { %v656_v4 = vmul.f32 %v2434_v60, %v648_v13  ;;  %v728_v8 = vmul.f32 %v2437_v56, %v720_v14  ;;  %v3564_v60 = vpop.permute.xlu1 %959 }
 0x2a3   : > { %v788_v17 = vpop.f32.mrf.mxu1  ;;  %v860_v18 = vpop.f32.mrf.mxu0 }
 0x2a4   : > { %v730_v23 = vadd.f32 %v728_v8, %v656_v4  ;;  %v789_v24 = vadd.f32 %v788_v17, %v3533_v12  ;;  %v861_v28 = vadd.f32 %v860_v18, %v3542_v55 }
 0x2a5   : > { %v2633_v31 = vpop.f32.mrf.mxu1  ;;  %v2641_v35 = vpop.f32.mrf.mxu0 }
 0x2a6   : > { %v799_v39 = vmul.f32 %v2440_v16, %v789_v24  ;;  %v871_v40 = vmul.f32 %v2443_v61, %v861_v28  ;;  %v3576_v28 = vpop.permute.xlu0 %1098 }
 0x2a7   : > { %v791_v41 = vpop.f32.mrf.mxu1  ;;  %v863_v29 = vpop.f32.mrf.mxu0 }
 0x2a8   : > { %v801_v22 = vadd.f32 %v799_v39, %v729_v10  ;;  %v792_v36 = vadd.f32 %v791_v41, %v3540_v53  ;;  %v864_v44 = vadd.f32 %v863_v29, %v3548_v2  ;;  %v2455_v29 = vld [vmem:[%s3538_s23 + $0x7] ss:$0 sm:$0xff] }
 0x2a9   : > { %v2634_v38 = vpop.f32.mrf.mxu1  ;;  %v2642_v43 = vpop.f32.mrf.mxu0 }
 0x2aa   : > { %v873_v63 = vadd.f32 %v871_v40, %v801_v22  ;;  %v800_v56 = vmul.f32 %v2440_v16, %v792_v36  ;;  %v872_v59 = vmul.f32 %v2443_v61, %v864_v44  ;;  %v3572_v16 = vpop.permute.xlu1 %1031  ;;  %v2452_v40 = vld [vmem:[%s3538_s23 + $0x6] ss:$0 sm:$0xff] }
 0x2ab   : > { %v932_v0 = vpop.f32.mrf.mxu1  ;;  %v1004_v11 = vpop.f32.mrf.mxu0 }
 0x2ac   : > { %v802_v34 = vadd.f32 %v800_v56, %v730_v23  ;;  %v933_v5 = vadd.f32 %v932_v0, %v3550_v9  ;;  %v1005_v7 = vadd.f32 %v1004_v11, %v3560_v37 }
 0x2ad   : > { %v2649_v10 = vpop.f32.mrf.mxu1  ;;  %v2657_v13 = vpop.f32.mrf.mxu0 }
 0x2ae   : > { %v874_v14 = vadd.f32 %v872_v59, %v802_v34  ;;  %v943_v15 = vmul.f32 %v2446_v26, %v933_v5  ;;  %v1015_v54 = vmul.f32 %v2449_v1, %v1005_v7  ;;  %v3582_v56 = vpop.permute.xlu1 %1103 }
 0x2af   : > { %v935_v4 = vpop.f32.mrf.mxu1  ;;  %v1007_v8 = vpop.f32.mrf.mxu0 }
 0x2b0   : > { %v945_v17 = vadd.f32 %v943_v15, %v873_v63  ;;  %v936_v61 = vadd.f32 %v935_v4, %v3556_v21  ;;  %v1008_v18 = vadd.f32 %v1007_v8, %v3564_v60 }
 0x2b1   : > { %v2650_v23 = vpop.f32.mrf.mxu1  ;;  %v2658_v24 = vpop.f32.mrf.mxu0 }
 0x2b2   : > { %v1017_v31 = vadd.f32 %v1015_v54, %v945_v17  ;;  %v944_v35 = vmul.f32 %v2446_v26, %v936_v61  ;;  %v1016_v39 = vmul.f32 %v2449_v1, %v1008_v18 }
 0x2b3   : > { %v1076_v41 = vpop.f32.mrf.mxu1  ;;  %v1148_v22 = vpop.f32.mrf.mxu0 }
 0x2b4   : > { %v946_v36 = vadd.f32 %v944_v35, %v874_v14  ;;  %v1077_v44 = vadd.f32 %v1076_v41, %v3568_v57  ;;  %v1149_v38 = vadd.f32 %v1148_v22, %v3576_v28 }
 0x2b5   : > { %v2665_v43 = vpop.f32.mrf.mxu1  ;;  %v2673_v63 = vpop.f32.mrf.mxu0 }
 0x2b6   : > { %v1018_v59 = vadd.f32 %v1016_v39, %v946_v36  ;;  %v1087_v0 = vmul.f32 %v2452_v40, %v1077_v44  ;;  %v1159_v11 = vmul.f32 %v2455_v29, %v1149_v38  ;;  %v1844_v38 = vsel %vm1833_vm12, nan, %v3398_v6  ;;  %v2921_v6 = vld [vmem:[%s3816_s4] sm:$0xff]   ;;  %v2465_v63 = vld [vmem:[%s3538_s23 + $0x8] ss:$0 sm:$0xff] }
 0x2b7   : > { %v1079_v34 = vpop.f32.mrf.mxu1  ;;  %v1151_v5 = vpop.f32.mrf.mxu0  ;;  %v1845_v43 = vpack.c.bf16 %v1844_v38, %v1844_v38 }
 0x2b8   : > { %v1089_v26 = vadd.f32 %v1087_v0, %v1017_v31  ;;  %v1080_v1 = vadd.f32 %v1079_v34, %v3572_v16  ;;  %v1152_v7 = vadd.f32 %v1151_v5, %v3582_v56  ;;  %v2468_v0 = vld [vmem:[%s3538_s23 + $0x9] ss:$0 sm:$0xff] }
 0x2b9   : > { %v2666_v10 = vpop.f32.mrf.mxu1  ;;  %v2674_v13 = vpop.f32.mrf.mxu0  ;;  %v1847_v27 = vsel %vm527_vm9, %v1845_v43, 0 }
 0x2ba   : > { %v3586_v14 = vadd.f32 %v1159_v11, %v1089_v26  ;;  %v1088_v15 = vmul.f32 %v2452_v40, %v1080_v1  ;;  %v1160_v54 = vmul.f32 %v2455_v29, %v1152_v7 }
 0x2bb   : > { %v2679_v4 = vpop.f32.mrf.mxu1 }
 0x2bc   : > { %v1090_v8 = vadd.f32 %v1088_v15, %v1018_v59  ;;  %v1321_v18 = vadd.f32 %v2679_v4, %v3416_v25 }
 0x2bd   : > { %v1312_v17 = vpop.f32.mrf.mxu1 }
 0x2be   : > { %v3588_v61 = vadd.f32 %v1160_v54, %v1090_v8  ;;  %v1329_v35 = vmax.f32 %v1321_v18, 0.0  ;;  %v1313_v39 = vadd.f32 %v1312_v17, %v3421_v30 }
 0x2bf   : > { %v2680_v23 = vpop.f32.mrf.mxu1 }
 0x2c0   : > { %v1324_v24 = vadd.f32 %v2680_v23, %v3418_v62  ;;  %v1327_v29 = vmax.f32 %v1313_v39, 0.0  ;;  %v2474_v39 = vld [vmem:[%s3538_s23 + $0xb] ss:$0 sm:$0xff] }
 0x2c1   : > { %v1315_v31 = vpop.f32.mrf.mxu1 }
 0x2c2   : > { %v1330_v41 = vmax.f32 %v1324_v24, 0.0  ;;  %v1316_v22 = vadd.f32 %v1315_v31, %v3424_v33  ;;  %v2471_v31 = vld [vmem:[%s3538_s23 + $0xa] ss:$0 sm:$0xff] }
 0x2c4   : > { %v1332_v36 = vpack.c.bf16 %v1330_v41, %v1329_v35  ;;  %v1328_v40 = vmax.f32 %v1316_v22, 0.0 }
 0x2c6   : > { %2682 = vmatpush3.bf16.msra.mxu0 %v1332_v36  ;;  %2690 = vmatpush3.bf16.msra.mxu1 %v1332_v36  ;;  %v1331_v44 = vpack.c.bf16 %v1328_v40, %v1327_v29 }
 0x2c7   : > { %2683 = vmatprep.subr.bf16.mxu0 %v3007_v20  ;;  %2691 = vmatprep.subr.bf16.mxu1 %v3007_v20 }
 0x2ca   : > { %2684 = vmatpush3.bf16.msra.mxu0 %v1331_v44  ;;  %2692 = vmatpush3.bf16.msra.mxu1 %v1331_v44 }
 0x2cb   : > { %2697 = vmatprep.subr.bf16.mxu0 %v3007_v20  ;;  %2705 = vmatprep.subr.bf16.mxu1 %v3007_v20 }
 0x2cd   : > { %2686 = vmatmul.mubr.msk.bf16.vlgmr.msra.gmra.mxu0 %vm606_vm11, %v3433_v45  ;;  %2694 = vmatmul.mubr.msk.bf16.vlgmr.msra.gmra.mxu1 %vm606_vm11, %v3438_v46 }
 0x2ce   : > { %2698 = vmatpush3.bf16.msra.mxu0 %v1332_v36  ;;  %2706 = vmatpush3.bf16.msra.mxu1 %v1332_v36 }
 0x2cf   : > { %2699 = vmatprep.subr.bf16.mxu0 %v3007_v20  ;;  %2707 = vmatprep.subr.bf16.mxu1 %v3007_v20 }
 0x2d0   : > { %2701 = vmatprep.mubr.msk.bf16.mxu0 %vm3008_vm10, %v3007_v20  ;;  %2709 = vmatprep.mubr.msk.bf16.mxu1 %vm3008_vm10, %v3007_v20 }
 0x2d2   : > { %2700 = vmatpush3.bf16.msra.mxu0 %v1331_v44  ;;  %2708 = vmatpush3.bf16.msra.mxu1 %v1331_v44 }
 0x2d3   : > { %2713 = vmatprep.subr.bf16.mxu0 %v3007_v20  ;;  %2721 = vmatprep.subr.bf16.mxu1 %v3007_v20 }
 0x2d5   : > { %2702 = vmatmul.mubr.msk.bf16.vlgmr.msra.gmra.mxu0 %vm606_vm11, %v3455_v32  ;;  %2710 = vmatmul.mubr.msk.bf16.vlgmr.msra.gmra.mxu1 %vm606_vm11, %v3460_v47 }
 0x2d6   : > { %2714 = vmatpush3.bf16.msra.mxu0 %v1332_v36  ;;  %2722 = vmatpush3.bf16.msra.mxu1 %v1332_v36 }
 0x2d7   : > { %2715 = vmatprep.subr.bf16.mxu0 %v3007_v20  ;;  %2723 = vmatprep.subr.bf16.mxu1 %v3007_v20 }
 0x2d8   : > { %2717 = vmatprep.mubr.msk.bf16.mxu0 %vm3008_vm10, %v3007_v20  ;;  %2725 = vmatprep.mubr.msk.bf16.mxu1 %vm3008_vm10, %v3007_v20 }
 0x2da   : > { %2716 = vmatpush3.bf16.msra.mxu0 %v1331_v44  ;;  %2724 = vmatpush3.bf16.msra.mxu1 %v1331_v44 }
 0x2db   : > { %2729 = vmatprep.subr.bf16.mxu0 %v3007_v20  ;;  %2737 = vmatprep.subr.bf16.mxu1 %v3007_v20 }
 0x2dd   : > { %2718 = vmatmul.mubr.msk.bf16.vlgmr.msra.gmra.mxu0 %vm606_vm11, %v3477_v42  ;;  %2726 = vmatmul.mubr.msk.bf16.vlgmr.msra.gmra.mxu1 %vm606_vm11, %v3482_v52 }
 0x2de   : > { %2730 = vmatpush3.bf16.msra.mxu0 %v1332_v36  ;;  %2738 = vmatpush3.bf16.msra.mxu1 %v1332_v36 }
 0x2df   : > { %2731 = vmatprep.subr.bf16.mxu0 %v3007_v20  ;;  %2739 = vmatprep.subr.bf16.mxu1 %v3007_v20 }
 0x2e0   : > { %2733 = vmatprep.mubr.msk.bf16.mxu0 %vm3008_vm10, %v3007_v20  ;;  %2741 = vmatprep.mubr.msk.bf16.mxu1 %vm3008_vm10, %v3007_v20 }
 0x2e2   : > { %2732 = vmatpush3.bf16.msra.mxu0 %v1331_v44  ;;  %2740 = vmatpush3.bf16.msra.mxu1 %v1331_v44 }
 0x2e3   : > { %2817 = vmatprep.subr.msk.bf16.mxu0 %vm527_vm9, %v1845_v43  ;;  %2751 = vmatprep.subr.bf16.mxu1 %v3007_v20 }
 0x2e5   : > { %2734 = vmatmul.mubr.msk.bf16.vlgmr.msra.gmra.mxu0 %vm606_vm11, %v3501_v48  ;;  %2742 = vmatmul.mubr.msk.bf16.vlgmr.msra.gmra.mxu1 %vm606_vm11, %v3506_v49 }
 0x2e6   : > { %2746 = vmatpush3.bf16.msra.mxu0 %v1847_v27  ;;  %2747 = vmatprep.mubr.msk.bf16.mxu0 %vm520_vm0, %v2921_v6 }
 0x2e7   : > { %2759 = vmatprep.subr.bf16.mxu0 %v3007_v20  ;;  %2755 = vmatprep.mubr.msk.bf16.mxu1 %vm3008_vm10, %v3007_v20 }
 0x2ed   : > { %2748 = vmatmul.mubr.msk.bf16.vlgmr.msra.gmra.mxu0 %vm520_vm0, %v3406_v19 }
 0x2ee   : > { %2763 = vmatprep.mubr.msk.bf16.mxu0 %vm3008_vm10, %v3007_v20 }
 0x38d   : > { %v1369_v59 = vpop.f32.mrf.mxu0  ;;  %v1419_v11 = vpop.f32.mrf.mxu1 }
 0x38e   : > { %v1370_v34 = vadd.f32 %v1369_v59, %v3524_v50  ;;  %v1420_v5 = vadd.f32 %v1419_v11, %v3528_v51 }
 0x38f   : > { %v2687_v26 = vpop.f32.mrf.mxu0  ;;  %v2695_v1 = vpop.f32.mrf.mxu1 }
 0x390   : > { %v1380_v7 = vmul.f32 %v2465_v63, %v1370_v34  ;;  %v1430_v10 = vmul.f32 %v2468_v0, %v1420_v5  ;;  %v2477_v1 = vld [vmem:[%s3538_s23 + $0xc] ss:$0 sm:$0xff] }
 0x391   : > { %v1372_v13 = vpop.f32.mrf.mxu0  ;;  %v1422_v15 = vpop.f32.mrf.mxu1 }
 0x392   : > { %v1382_v19 = vadd.f32 %v1380_v7, %v3586_v14  ;;  %v1373_v54 = vadd.f32 %v1372_v13, %v3526_v3  ;;  %v1423_v4 = vadd.f32 %v1422_v15, %v3530_v58 }
 0x393   : > { %v2688_v8 = vpop.f32.mrf.mxu0  ;;  %v2696_v17 = vpop.f32.mrf.mxu1 }
 0x394   : > { %v1432_v18 = vadd.f32 %v1430_v10, %v1382_v19  ;;  %v1381_v23 = vmul.f32 %v2465_v63, %v1373_v54  ;;  %v1431_v24 = vmul.f32 %v2468_v0, %v1423_v4  ;;  %v2480_v10 = vld [vmem:[%s3538_s23 + $0xd] ss:$0 sm:$0xff] }
 0x395   : > { %v1469_v35 = vpop.f32.mrf.mxu0  ;;  %v1519_v41 = vpop.f32.mrf.mxu1 }
 0x396   : > { %v1383_v22 = vadd.f32 %v1381_v23, %v3588_v61  ;;  %v1470_v36 = vadd.f32 %v1469_v35, %v3533_v12  ;;  %v1520_v40 = vadd.f32 %v1519_v41, %v3542_v55 }
 0x397   : > { %v2703_v14 = vpop.f32.mrf.mxu0  ;;  %v2711_v29 = vpop.f32.mrf.mxu1 }
 0x398   : > { %v1433_v44 = vadd.f32 %v1431_v24, %v1383_v22  ;;  %v1480_v38 = vmul.f32 %v2471_v31, %v1470_v36  ;;  %v1530_v43 = vmul.f32 %v2474_v39, %v1520_v40 }
 0x399   : > { %v1472_v27 = vpop.f32.mrf.mxu0  ;;  %v1522_v6 = vpop.f32.mrf.mxu1 }
 0x39a   : > { %v1482_v63 = vadd.f32 %v1480_v38, %v1432_v18  ;;  %v1473_v59 = vadd.f32 %v1472_v27, %v3540_v53  ;;  %v1523_v0 = vadd.f32 %v1522_v6, %v3548_v2 }
 0x39b   : > { %v2704_v11 = vpop.f32.mrf.mxu0  ;;  %v2712_v61 = vpop.f32.mrf.mxu1 }
 0x39c   : > { %v1532_v34 = vadd.f32 %v1530_v43, %v1482_v63  ;;  %v1481_v5 = vmul.f32 %v2471_v31, %v1473_v59  ;;  %v1531_v26 = vmul.f32 %v2474_v39, %v1523_v0  ;;  %v2486_v43 = vld [vmem:[%s3538_s23 + $0xf] ss:$0 sm:$0xff] }
 0x39d   : > { %v1569_v7 = vpop.f32.mrf.mxu0  ;;  %v1619_v13 = vpop.f32.mrf.mxu1 }
 0x39e   : > { %v1483_v15 = vadd.f32 %v1481_v5, %v1433_v44  ;;  %v1570_v19 = vadd.f32 %v1569_v7, %v3550_v9  ;;  %v1620_v54 = vadd.f32 %v1619_v13, %v3560_v37  ;;  %v2483_v44 = vld [vmem:[%s3538_s23 + $0xe] ss:$0 sm:$0xff] }
 0x39f   : > { %v2719_v4 = vpop.f32.mrf.mxu0  ;;  %v2727_v8 = vpop.f32.mrf.mxu1 }
 0x3a0   : > { %v1533_v17 = vadd.f32 %v1531_v26, %v1483_v15  ;;  %v1580_v18 = vmul.f32 %v2477_v1, %v1570_v19  ;;  %v1630_v23 = vmul.f32 %v2480_v10, %v1620_v54 }
 0x3a1   : > { %v1572_v24 = vpop.f32.mrf.mxu0  ;;  %v1622_v35 = vpop.f32.mrf.mxu1 }
 0x3a2   : > { %v1582_v31 = vadd.f32 %v1580_v18, %v1532_v34  ;;  %v1573_v39 = vadd.f32 %v1572_v24, %v3556_v21  ;;  %v1623_v41 = vadd.f32 %v1622_v35, %v3564_v60 }
 0x3a3   : > { %v2720_v22 = vpop.f32.mrf.mxu0  ;;  %v2728_v36 = vpop.f32.mrf.mxu1 }
 0x3a4   : > { %v1632_v40 = vadd.f32 %v1630_v23, %v1582_v31  ;;  %v1581_v14 = vmul.f32 %v2477_v1, %v1573_v39  ;;  %v1631_v29 = vmul.f32 %v2480_v10, %v1623_v41 }
 0x3a5   : > { %v1669_v38 = vpop.f32.mrf.mxu0  ;;  %v1719_v27 = vpop.f32.mrf.mxu1 }
 0x3a6   : > { %v1583_v6 = vadd.f32 %v1581_v14, %v1533_v17  ;;  %v1670_v63 = vadd.f32 %v1669_v38, %v3568_v57  ;;  %v1720_v59 = vadd.f32 %v1719_v27, %v3576_v28 }
 0x3a7   : > { %v2735_v0 = vpop.f32.mrf.mxu0  ;;  %v2743_v11 = vpop.f32.mrf.mxu1 }
 0x3a8   : > { %v1633_v61 = vadd.f32 %v1631_v29, %v1583_v6  ;;  %v1680_v34 = vmul.f32 %v2483_v44, %v1670_v63  ;;  %v1730_v5 = vmul.f32 %v2486_v43, %v1720_v59  ;;  %v2502_v11 = vld [vmem:[%s3538_s23 + $0x12] ss:$0 sm:$0xff] }
 0x3a9   : > { %v1672_v26 = vpop.f32.mrf.mxu0  ;;  %v1722_v7 = vpop.f32.mrf.mxu1 }
 0x3aa   : > { %v1682_v13 = vadd.f32 %v1680_v34, %v1632_v40  ;;  %v1673_v1 = vadd.f32 %v1672_v26, %v3572_v16  ;;  %v1723_v10 = vadd.f32 %v1722_v7, %v3582_v56 }
 0x3ab   : > { %v2736_v15 = vpop.f32.mrf.mxu0  ;;  %v2744_v19 = vpop.f32.mrf.mxu1 }
 0x3ac   : > { %v3678_v54 = vadd.f32 %v1730_v5, %v1682_v13  ;;  %v1681_v4 = vmul.f32 %v2483_v44, %v1673_v1  ;;  %v1731_v8 = vmul.f32 %v2486_v43, %v1723_v10  ;;  %v2505_v13 = vld [vmem:[%s3538_s23 + $0x13] ss:$0 sm:$0xff] }
 0x3ad   : > { %v2749_v17 = vpop.f32.mrf.mxu0 }
 0x3ae   : > { %v1683_v18 = vadd.f32 %v1681_v4, %v1633_v61  ;;  %v1892_v35 = vadd.f32 %v2749_v17, %v3416_v25 }
 0x3af   : > { %v1883_v23 = vpop.f32.mrf.mxu0 }
 0x3b0   : > { %v3680_v24 = vadd.f32 %v1731_v8, %v1683_v18  ;;  %v1900_v22 = vmax.f32 %v1892_v35, 0.0  ;;  %v1884_v36 = vadd.f32 %v1883_v23, %v3421_v30 }
 0x3b1   : > { %v2750_v31 = vpop.f32.mrf.mxu0 }
 0x3b2   : > { %v1895_v39 = vadd.f32 %v2750_v31, %v3418_v62  ;;  %v1898_v38 = vmax.f32 %v1884_v36, 0.0  ;;  %v2496_v62 = vld [vmem:[%s3538_s23 + $0x10] ss:$0 sm:$0xff] }
 0x3b3   : > { %v1886_v41 = vpop.f32.mrf.mxu0 }
 0x3b4   : > { %v1901_v40 = vmax.f32 %v1895_v39, 0.0  ;;  %v1887_v14 = vadd.f32 %v1886_v41, %v3424_v33 }
 0x3b6   : > { %v1903_v29 = vpack.c.bf16 %v1901_v40, %v1900_v22  ;;  %v1899_v44 = vmax.f32 %v1887_v14, 0.0  ;;  %v2511_v40 = vld [vmem:[%s3538_s23 + $0x15] ss:$0 sm:$0xff] }
 0x3b8   : > { %2752 = vmatpush3.bf16.msra.mxu1 %v1903_v29  ;;  %2760 = vmatpush3.bf16.msra.mxu0 %v1903_v29  ;;  %v1902_v25 = vpack.c.bf16 %v1899_v44, %v1898_v38 }
 0x3b9   : > { %2753 = vmatprep.subr.bf16.mxu1 %v3007_v20  ;;  %2761 = vmatprep.subr.bf16.mxu0 %v3007_v20 }
 0x3bc   : > { %2754 = vmatpush3.bf16.msra.mxu1 %v1902_v25  ;;  %2762 = vmatpush3.bf16.msra.mxu0 %v1902_v25 }
 0x3bd   : > { %2767 = vmatprep.subr.bf16.mxu1 %v3007_v20  ;;  %2775 = vmatprep.subr.bf16.mxu0 %v3007_v20 }
 0x3bf   : > { %2756 = vmatmul.mubr.msk.bf16.vlgmr.msra.gmra.mxu1 %vm606_vm11, %v3433_v45  ;;  %2764 = vmatmul.mubr.msk.bf16.vlgmr.msra.gmra.mxu0 %vm606_vm11, %v3438_v46 }
 0x3c0   : > { %2768 = vmatpush3.bf16.msra.mxu1 %v1903_v29  ;;  %2776 = vmatpush3.bf16.msra.mxu0 %v1903_v29 }
 0x3c1   : > { %2769 = vmatprep.subr.bf16.mxu1 %v3007_v20  ;;  %2777 = vmatprep.subr.bf16.mxu0 %v3007_v20 }
 0x3c2   : > { %2771 = vmatprep.mubr.msk.bf16.mxu1 %vm3008_vm10, %v3007_v20  ;;  %2779 = vmatprep.mubr.msk.bf16.mxu0 %vm3008_vm10, %v3007_v20 }
 0x3c4   : > { %2770 = vmatpush3.bf16.msra.mxu1 %v1902_v25  ;;  %2778 = vmatpush3.bf16.msra.mxu0 %v1902_v25 }
 0x3c5   : > { %2783 = vmatprep.subr.bf16.mxu1 %v3007_v20  ;;  %2791 = vmatprep.subr.bf16.mxu0 %v3007_v20 }
 0x3c7   : > { %2772 = vmatmul.mubr.msk.bf16.vlgmr.msra.gmra.mxu1 %vm606_vm11, %v3455_v32  ;;  %2780 = vmatmul.mubr.msk.bf16.vlgmr.msra.gmra.mxu0 %vm606_vm11, %v3460_v47  ;;  %v2499_v32 = vld [vmem:[%s3538_s23 + $0x11] ss:$0 sm:$0xff] }
 0x3c8   : > { %2784 = vmatpush3.bf16.msra.mxu1 %v1903_v29  ;;  %2792 = vmatpush3.bf16.msra.mxu0 %v1903_v29 }
 0x3c9   : > { %2785 = vmatprep.subr.bf16.mxu1 %v3007_v20  ;;  %2793 = vmatprep.subr.bf16.mxu0 %v3007_v20 }
 0x3ca   : > { %2787 = vmatprep.mubr.msk.bf16.mxu1 %vm3008_vm10, %v3007_v20  ;;  %2795 = vmatprep.mubr.msk.bf16.mxu0 %vm3008_vm10, %v3007_v20 }
 0x3cc   : > { %2786 = vmatpush3.bf16.msra.mxu1 %v1902_v25  ;;  %2794 = vmatpush3.bf16.msra.mxu0 %v1902_v25 }
 0x3cd   : > { %2799 = vmatprep.subr.bf16.mxu1 %v3007_v20  ;;  %2807 = vmatprep.subr.bf16.mxu0 %v3007_v20 }
 0x3cf   : > { %2788 = vmatmul.mubr.msk.bf16.vlgmr.msra.gmra.mxu1 %vm606_vm11, %v3477_v42  ;;  %2796 = vmatmul.mubr.msk.bf16.vlgmr.msra.gmra.mxu0 %vm606_vm11, %v3482_v52 }
 0x3d0   : > { %2800 = vmatpush3.bf16.msra.mxu1 %v1903_v29  ;;  %2808 = vmatpush3.bf16.msra.mxu0 %v1903_v29 }
 0x3d1   : > { %2801 = vmatprep.subr.bf16.mxu1 %v3007_v20  ;;  %2809 = vmatprep.subr.bf16.mxu0 %v3007_v20 }
 0x3d2   : > { %2803 = vmatprep.mubr.msk.bf16.mxu1 %vm3008_vm10, %v3007_v20  ;;  %2811 = vmatprep.mubr.msk.bf16.mxu0 %vm3008_vm10, %v3007_v20 }
 0x3d4   : > { %2802 = vmatpush3.bf16.msra.mxu1 %v1902_v25  ;;  %2810 = vmatpush3.bf16.msra.mxu0 %v1902_v25 }
 0x3d7   : > { %2804 = vmatmul.mubr.msk.bf16.vlgmr.msra.gmra.mxu1 %vm606_vm11, %v3501_v48  ;;  %2812 = vmatmul.mubr.msk.bf16.vlgmr.msra.gmra.mxu0 %vm606_vm11, %v3506_v49 }
 0x47f   : > { %v1940_v30 = vpop.f32.mrf.mxu1  ;;  %v1990_v33 = vpop.f32.mrf.mxu0 }
 0x480   : > { %v1941_v45 = vadd.f32 %v1940_v30, %v3524_v50  ;;  %v1991_v46 = vadd.f32 %v1990_v33, %v3528_v51 }
 0x481   : > { %v2757_v47 = vpop.f32.mrf.mxu1  ;;  %v2765_v42 = vpop.f32.mrf.mxu0 }
 0x482   : > { %v1951_v20 = vmul.f32 %v2496_v62, %v1941_v45  ;;  %v2001_v27 = vmul.f32 %v2499_v32, %v1991_v46 }
 0x483   : > { %v1943_v52 = vpop.f32.mrf.mxu1  ;;  %v1993_v43 = vpop.f32.mrf.mxu0 }
 0x484   : > { %v1953_v48 = vadd.f32 %v1951_v20, %v3678_v54  ;;  %v1944_v49 = vadd.f32 %v1943_v52, %v3526_v3  ;;  %v1994_v6 = vadd.f32 %v1993_v43, %v3530_v58 }
 0x485   : > { %v2758_v63 = vpop.f32.mrf.mxu1  ;;  %v2766_v59 = vpop.f32.mrf.mxu0 }
 0x486   : > { %v2003_v50 = vadd.f32 %v2001_v27, %v1953_v48  ;;  %v1952_v0 = vmul.f32 %v2496_v62, %v1944_v49  ;;  %v2002_v5 = vmul.f32 %v2499_v32, %v1994_v6  ;;  %v2514_v32 = vld [vmem:[%s3538_s23 + $0x16] ss:$0 sm:$0xff]  ;;  %v2517_v27 = vld [vmem:[%s3538_s23 + $0x17] ss:$0 sm:$0xff] }
 0x487   : > { %v2040_v51 = vpop.f32.mrf.mxu1  ;;  %v2090_v61 = vpop.f32.mrf.mxu0 }
 0x488   : > { %v1954_v34 = vadd.f32 %v1952_v0, %v3680_v24  ;;  %v2041_v26 = vadd.f32 %v2040_v51, %v3533_v12  ;;  %v2091_v7 = vadd.f32 %v2090_v61, %v3542_v55  ;;  %v2508_v55 = vld [vmem:[%s3538_s23 + $0x14] ss:$0 sm:$0xff]  ;;  %s2922_s23 = scalar_lea.vmem %s3758_s12, 256 }
 0x489   : > { %v2773_v1 = vpop.f32.mrf.mxu1  ;;  %v2781_v3 = vpop.f32.mrf.mxu0  ;;  %p2923_p12 = scmp.ne.s32.totalorder %s3758_s12, %s2922_s23  ;;  %p2930_p2 = scmp.lt.s32.totalorder %s2928_s24, %s2922_s23 }
 0x48a   : > { %v2004_v10 = vadd.f32 %v2002_v5, %v1954_v34  ;;  %v2051_v58 = vmul.f32 %v2502_v11, %v2041_v26  ;;  %v2101_v4 = vmul.f32 %v2505_v13, %v2091_v7 }
 0x48b   : > { %v2043_v15 = vpop.f32.mrf.mxu1  ;;  %v2093_v19 = vpop.f32.mrf.mxu0  ;;  %p2924_p13 = pnand %p2923_p12, %p3097_p4  ;;  %p2931_p3 = por %p2930_p2, %p2929_p1 }
 0x48c   : > { %v2053_v54 = vadd.f32 %v2051_v58, %v2003_v50  ;;  %v2044_v8 = vadd.f32 %v2043_v15, %v3540_v53  ;;  %v2094_v17 = vadd.f32 %v2093_v19, %v3548_v2 }
 0x48d   : > { %v2774_v18 = vpop.f32.mrf.mxu1  ;;  %v2782_v23 = vpop.f32.mrf.mxu0  ;;  %p2925_p0 = pneg %p2924_p13 }
 0x48e   : > { %v2103_v12 = vadd.f32 %v2101_v4, %v2053_v54  ;;  %v2052_v24 = vmul.f32 %v2502_v11, %v2044_v8  ;;  %v2102_v41 = vmul.f32 %v2505_v13, %v2094_v17 }
 0x48f   : > { %v2140_v35 = vpop.f32.mrf.mxu1  ;;  %v2190_v31 = vpop.f32.mrf.mxu0  ;;  %p2932_p5 = pnand %p2931_p3, %p2925_p0 }
 0x490   : > { %v2054_v39 = vadd.f32 %v2052_v24, %v2004_v10  ;;  %v2141_v22 = vadd.f32 %v2140_v35, %v3550_v9  ;;  %v2191_v36 = vadd.f32 %v2190_v31, %v3560_v37 }
 0x491   : > { %v2789_v14 = vpop.f32.mrf.mxu1  ;;  %v2797_v53 = vpop.f32.mrf.mxu0 }
 0x492   : > { %v2104_v29 = vadd.f32 %v2102_v41, %v2054_v39  ;;  %v2151_v2 = vmul.f32 %v2508_v55, %v2141_v22  ;;  %v2201_v62 = vmul.f32 %v2511_v40, %v2191_v36 }
 0x493   : > { %v2143_v44 = vpop.f32.mrf.mxu1  ;;  %v2193_v38 = vpop.f32.mrf.mxu0 }
 0x494   : > { %v2153_v25 = vadd.f32 %v2151_v2, %v2103_v12  ;;  %v2144_v30 = vadd.f32 %v2143_v44, %v3556_v21  ;;  %v2194_v33 = vadd.f32 %v2193_v38, %v3564_v60 }
 0x495   : > { %v2790_v45 = vpop.f32.mrf.mxu1  ;;  %v2798_v9 = vpop.f32.mrf.mxu0 }
 0x496   : > { %v2203_v37 = vadd.f32 %v2201_v62, %v2153_v25  ;;  %v2152_v46 = vmul.f32 %v2508_v55, %v2144_v30  ;;  %v2202_v52 = vmul.f32 %v2511_v40, %v2194_v33 }
 0x497   : > { %v2240_v47 = vpop.f32.mrf.mxu1  ;;  %v2290_v42 = vpop.f32.mrf.mxu0 }
 0x498   : > { %v2154_v20 = vadd.f32 %v2152_v46, %v2104_v29  ;;  %v2241_v43 = vadd.f32 %v2240_v47, %v3568_v57  ;;  %v2291_v48 = vadd.f32 %v2290_v42, %v3576_v28 }
 0x499   : > { %v2805_v49 = vpop.f32.mrf.mxu1  ;;  %v2813_v21 = vpop.f32.mrf.mxu0 }
 0x49a   : > { %v2204_v60 = vadd.f32 %v2202_v52, %v2154_v20  ;;  %v2251_v6 = vmul.f32 %v2514_v32, %v2241_v43  ;;  %v2301_v0 = vmul.f32 %v2517_v27, %v2291_v48 }
 0x49b   : > { %v2243_v63 = vpop.f32.mrf.mxu1  ;;  %v2293_v59 = vpop.f32.mrf.mxu0 }
 0x49c   : > { %v2253_v50 = vadd.f32 %v2251_v6, %v2203_v37  ;;  %v2244_v11 = vadd.f32 %v2243_v63, %v3572_v16  ;;  %v2294_v51 = vadd.f32 %v2293_v59, %v3582_v56 }
 0x49d   : > { %v2806_v57 = vpop.f32.mrf.mxu1  ;;  %v2814_v61 = vpop.f32.mrf.mxu0 }
 0x49e   : > { %v2303_v28 = vadd.f32 %v2301_v0, %v2253_v50  ;;  %v2252_v34 = vmul.f32 %v2514_v32, %v2244_v11  ;;  %v2302_v26 = vmul.f32 %v2517_v27, %v2294_v51 }
 0x4a0   : > { %2305 = vst [vmem:[%s341_s11] sm:$0xff] %v2303_v28  ;;  %v2254_v5 = vadd.f32 %v2252_v34, %v2204_v60 }
 0x4a2   : > { %v2304_v16 = vadd.f32 %v2302_v26, %v2254_v5 }
 0x4a4   : > { %2306 = vst [vmem:[%s341_s11 + $0x8] sm:$0xff] %v2304_v16 }
 0x4a5   : > { %2935 = shalt.err (!%p2932_p5)
}
 0x4a6   : > { %s2936_s25 = scalar_lea.hbm %s3763_s20, 256  ;;  %s2940_s16 = scalar_lea.hbm %s3820_s8, 512 }
 0x4a7   : > { %p2937_p6 = scmp.ne.s32.totalorder %s3763_s20, %s2936_s25  ;;  %p2941_p10 = scmp.lt.s32.totalorder %s3763_s20, %s3820_s8 }
 0x4a8   : > { %p2942_p11 = scmp.lt.s32.totalorder %s2940_s16, %s2936_s25 }
 0x4a9   : > { %p2938_p7 = pnand %p2937_p6, %p3097_p4 }
 0x4aa   : > { %p2943_p12 = por %p2942_p11, %p2941_p10 }
 0x4ab   : > { %p2939_p9 = pneg %p2938_p7 }
 0x4ad   : > { %p2944_p13 = pnand %p2943_p12, %p2939_p9 }
 0x4af   : > { %2947 = shalt.err (!%p2944_p13)
}
 0x4b0   : > { %s3010_s23 = smov 128   ;;  %s3011_s30 = smov 8  }
 0x4b1   : > { %2831 = dma.vmem_to_hbm [thread:$0]  (%p3097_p4), %s3758_s12, 256, %s3763_s20, %s3767_s22, %s3010_s23, %s3010_s23, %s3011_s30  }
 0x4b2 PF: > { %p2837_p0 = scmp.ge.s32.totalorder %s2998_s10, 2  ;;  %s2337_s14 = sand.u32 1, %s2978_s27  }
 0x4b3   : > { %s2338_s24 = scalar_lea.sflag [#allocation3], %s2337_s14 }
 0x4b4   : > { %p2834_p1 = pnand %p2837_p0, %p3104_p8 }
 0x4b6   : > { %p2835_p2 = pneg %p2834_p1 }
 0x4b8   : > { %2973 = dma.done.wait (%p2835_p2), %s2338_s24, 256  }
 0x4b9   : > { %2975 = vsyncadd (%p2835_p2), %s2338_s24, 4294967040  ;;  %s21_s10 = sadd.s32 1, %s2998_s10   ;;  %s3829_s27 = smov %s2982_s28 }
 0x4ba   : > { %p18_p3 = scmp.ge.s32.totalorder %s21_s10, 4   ;;  %s3830_s28 = smov %s2986_s29 }
 0x4bb   : > { %s3831_s29 = smov %s3110_s18  ;;  %s3832_s30 = smov %s2994_s9 }
 0x4bc   : > { %s3833_s9 = smov %s3835_s13  ;;  %20 = sbr.rel (!%p18_p3) target bundleno = 4 (0x4), region = 92 }
 0x4c1   :  { %2343 = vsyncpa [#allocation3], 1 }
 0x4c2   :  { %2345 = vsyncpa [#allocation3 + $0x1], 1 }

</bundles_post_ra>
